<compile_context>
chip_gen: v6e
topology: v6e:2x2x1
jax: 0.10.0
libtpu: 0.0.40
codegen_flags: <defaults>
</compile_context>

<pallas_src>
import functools

import jax
import jax.numpy as jnp
from jax import lax
from jax.experimental import pallas as pl
from jax.experimental.pallas import tpu as pltpu


def basic_block_kernel(x_ref, imask_ref, w1_ref, s1_ref, b1_ref,
                       w2_ref, s2_ref, b2_ref, out_ref, buf_ref, *, wp, off):
    """One block of `block_n` images per grid step, stacked on the lane axis.

    x_ref     : (1, C, Lb)  bf16  padded images, spatial flattened & lane-padded
    imask_ref : (1, Lb)     f32   1 on interior pixels, 0 on halo ring / pad lanes
    w*_ref    : (9, C, C)   bf16  conv weights, tap-major (t, cout, cin)
    s*/b*_ref : (C, 1)      f32   folded BatchNorm scale / bias
    out_ref   : (1, C, Lb)  f32   padded-layout output (interior sliced by wrapper)
    buf_ref   : (C, L)      f32   staging slab, 128-lane zero guard on both ends
    """
    C = x_ref.shape[1]
    Lb = x_ref.shape[2]
    L = buf_ref.shape[1]

    # Zero only the two 128-lane guard strips, every step (stays correct when
    # the batch grid axis is sharded across TensorCores).
    buf_ref[:, 0:off] = jnp.zeros((C, off), jnp.float32)
    buf_ref[:, off + Lb:L] = jnp.zeros((C, L - off - Lb), jnp.float32)

    # Constant lane offsets of the nine 3x3 taps in the padded-flat layout.
    offs = [(kh - 1) * wp + (kw - 1) for kh in range(3) for kw in range(3)]

    def conv3x3(w_ref):
        # Nine accumulating MXU dots; RHS are constant-offset lane slices of
        # the zero-guarded slab (no im2col patch materialised in VMEM).
        acc = None
        for t, d in enumerate(offs):
            tap = buf_ref[:, off + d:off + d + Lb].astype(jnp.bfloat16)
            part = jnp.dot(w_ref[t], tap, preferred_element_type=jnp.float32)
            acc = part if acc is None else acc + part
        return acc

    x_bf = x_ref[0]                           # (C, Lb) bf16
    imask = imask_ref[...]                    # (1, Lb) f32
    identity = x_bf.astype(jnp.float32)       # residual path, f32

    # conv1 -> bn1 -> relu.  imask zeroes halo/pad lanes so they act as the
    # zero padding (and inter-image guard) seen by conv2.
    buf_ref[:, off:off + Lb] = identity       # lane-aligned f32 store
    h1 = conv3x3(w1_ref)
    a1 = jnp.maximum(h1 * s1_ref[...] + b1_ref[...], 0.0) * imask

    # conv2 -> bn2 -> + identity -> relu (all f32 on the VPU).
    buf_ref[:, off:off + Lb] = a1
    h2 = conv3x3(w2_ref)
    y = jnp.maximum(h2 * s2_ref[...] + b2_ref[...] + identity, 0.0)

    out_ref[0] = y.astype(out_ref.dtype)


def basic_block_pallas(x_nchw, w1, g1, be1, m1, v1, w2, g2, be2, m2, v2,
                       eps=1e-5, block_n=2):
    N, Cin, H, W = x_nchw.shape
    Cout = w1.shape[3]
    assert Cin == Cout, "identity path requires inplanes == planes"
    assert N % block_n == 0, "batch must be divisible by block_n"

    Hp, Wp = H + 2, W + 2
    Np = Hp * Wp
    Npad = ((Np + 127) // 128) * 128          # lane-pad per image: 324 -> 384
    NB = N // block_n                          # grid length (keep even for v7x)
    Lb = block_n * Npad                        # lanes per grid step (mult. of 128)
    off = 128                                  # lane-aligned zero guard width
    L = Lb + 2 * off                           # staging slab length (mult. of 128)

    # One-time host-side spatial pad + lane pad + bf16 cast + block_n images
    # stacked on the lane axis.  Inside the kernel every 3x3 tap is then a
    # constant-offset, full-width lane slice; per-image halo + pad lanes are
    # zero so taps never leak between stacked images at needed output lanes.
    xp = jnp.pad(x_nchw.astype(jnp.bfloat16),
                 ((0, 0), (0, 0), (1, 1), (1, 1))).reshape(N, Cin, Np)
    xp = jnp.pad(xp, ((0, 0), (0, 0), (0, Npad - Np)))
    xp = xp.reshape(NB, block_n, Cin, Npad).transpose(0, 2, 1, 3)
    xp = xp.reshape(NB, Cin, Lb)

    # 1 on interior pixels, 0 on the halo ring and the lane padding.
    im = jnp.pad(jnp.ones((H, W), jnp.float32), ((1, 1), (1, 1))).reshape(Np)
    im = jnp.pad(im, (0, Npad - Np))
    imask = jnp.tile(im, block_n).reshape(1, Lb)

    # Tap-major weight layout for the MXU: (9, Cout, Cin), bf16.
    w1t = jnp.transpose(w1.reshape(9, Cin, Cout), (0, 2, 1)).astype(jnp.bfloat16)
    w2t = jnp.transpose(w2.reshape(9, Cout, Cout), (0, 2, 1)).astype(jnp.bfloat16)

    # Fold inference-mode BatchNorm into per-channel scale/bias (f32).
    inv1 = g1 / jnp.sqrt(v1 + eps)
    s1 = inv1.reshape(Cout, 1).astype(jnp.float32)
    b1 = (be1 - m1 * inv1).reshape(Cout, 1).astype(jnp.float32)
    inv2 = g2 / jnp.sqrt(v2 + eps)
    s2 = inv2.reshape(Cout, 1).astype(jnp.float32)
    b2 = (be2 - m2 * inv2).reshape(Cout, 1).astype(jnp.float32)

    kernel = functools.partial(basic_block_kernel, wp=Wp, off=off)

    grid_spec = pltpu.PrefetchScalarGridSpec(
        num_scalar_prefetch=0,
        grid=(NB,),
        in_specs=[
            pl.BlockSpec((1, Cin, Lb), lambda n: (n, 0, 0)),
            pl.BlockSpec((1, Lb), lambda n: (0, 0)),
            pl.BlockSpec((9, Cout, Cin), lambda n: (0, 0, 0)),
            pl.BlockSpec((Cout, 1), lambda n: (0, 0)),
            pl.BlockSpec((Cout, 1), lambda n: (0, 0)),
            pl.BlockSpec((9, Cout, Cout), lambda n: (0, 0, 0)),
            pl.BlockSpec((Cout, 1), lambda n: (0, 0)),
            pl.BlockSpec((Cout, 1), lambda n: (0, 0)),
        ],
        out_specs=pl.BlockSpec((1, Cout, Lb), lambda n: (n, 0, 0)),
        scratch_shapes=[
            pltpu.VMEM((Cin, L), jnp.float32),   # zero-guarded f32 staging slab
        ],
    )

    out_flat = pl.pallas_call(
        kernel,
        out_shape=jax.ShapeDtypeStruct((NB, Cout, Lb), jnp.float32),
        grid_spec=grid_spec,
        compiler_params=pltpu.CompilerParams(
            # batch blocks are independent -> v7x can split them across its 2 TCs
            dimension_semantics=("parallel",),
            # actual per-step VMEM use is well under 1 MiB (double-buffered
            # 12 KiB in / 24 KiB out blocks + 32 KiB slab); 32 MiB is a safe
            # explicit budget within every generation's scoped default.
            vmem_limit_bytes=32 * 1024 * 1024,
        ),
    )(xp, imask, w1t, s1, b1, w2t, s2, b2)

    # Unstack images, drop lane padding + halo ring.  Halo lanes hold junk by
    # design; out_flat must never be consumed directly.
    out = out_flat.reshape(NB, Cout, block_n, Npad)[:, :, :, :Np]
    out = out.transpose(0, 2, 1, 3).reshape(N, Cout, Hp, Wp)[:, :, 1:H + 1, 1:W + 1]
    return out.astype(x_nchw.dtype)


def basic_block_reference(x_nchw, w1, g1, be1, m1, v1, w2, g2, be2, m2, v2,
                          eps=1e-5):
    dn = ("NCHW", "HWIO", "NCHW")

    def bn(y, g, b, m, v):
        c = y.shape[1]
        return (g.reshape(1, c, 1, 1) * (y - m.reshape(1, c, 1, 1))
                / jnp.sqrt(v.reshape(1, c, 1, 1) + eps) + b.reshape(1, c, 1, 1))

    o = lax.conv_general_dilated(x_nchw, w1, (1, 1), ((1, 1), (1, 1)),
                                 dimension_numbers=dn)
    o = jax.nn.relu(bn(o, g1, be1, m1, v1))
    o = lax.conv_general_dilated(o, w2, (1, 1), ((1, 1), (1, 1)),
                                 dimension_numbers=dn)
    o = bn(o, g2, be2, m2, v2)
    return jax.nn.relu(o + x_nchw)


if __name__ == "__main__":
    # Small, BasicBlock-consistent shapes: batch=4, inplanes=planes=8, 16x16.
    # block_n=2 -> grid=(2,): 2 images per step, grid even for v7x's 2 TCs.
    N, C, HS = 4, 8, 16
    key = jax.random.PRNGKey(0)
    keys = jax.random.split(key, 10)

    x = jax.random.normal(keys[0], (N, C, HS, HS), jnp.float32)   # NCHW

    # conv weights in HWIO (kh, kw, Cin, Cout)
    w1 = jax.random.normal(keys[1], (3, 3, C, C), jnp.float32) * 0.1
    w2 = jax.random.normal(keys[2], (3, 3, C, C), jnp.float32) * 0.1

    # BatchNorm params / running stats (deterministic, inference mode)
    g1 = jax.random.uniform(keys[3], (C,), jnp.float32, 0.5, 1.5)
    be1 = jax.random.normal(keys[4], (C,), jnp.float32) * 0.1
    m1 = jax.random.normal(keys[5], (C,), jnp.float32) * 0.1
    v1 = jax.random.uniform(keys[6], (C,), jnp.float32, 0.5, 1.5)
    g2 = jax.random.uniform(keys[7], (C,), jnp.float32, 0.5, 1.5)
    be2 = jax.random.normal(keys[8], (C,), jnp.float32) * 0.1
    m2 = jax.random.normal(keys[9], (C,), jnp.float32) * 0.1
    v2 = jnp.linspace(0.6, 1.4, C, dtype=jnp.float32)

    out = basic_block_pallas(x, w1, g1, be1, m1, v1, w2, g2, be2, m2, v2,
                             block_n=2)
    out = jax.block_until_ready(out)

    ref = basic_block_reference(x, w1, g1, be1, m1, v1, w2, g2, be2, m2, v2)
    ref = jax.block_until_ready(ref)

    assert out.shape == (N, C, HS, HS)
    # bf16 HBM activations + bf16 MXU operands (f32 accumulation / BN / residual)
    # -> looser tolerance than a pure-f32 path.
    assert jnp.allclose(out, ref, atol=4e-2, rtol=4e-2), (
        float(jnp.max(jnp.abs(out - ref))))
    print("KERNEL_OK")
</pallas_src>

<mosaic_0001>
module attributes {stable_mosaic.version = 11 : i64} {
  func.func @basic_block_kernel(%arg0: i32, %arg1: memref<1x8x768xbf16, #tpu.memory_space<vmem>>, %arg2: memref<1x768xf32, #tpu.memory_space<vmem>>, %arg3: memref<9x8x8xbf16, #tpu.memory_space<vmem>>, %arg4: memref<8x1xf32, #tpu.memory_space<vmem>>, %arg5: memref<8x1xf32, #tpu.memory_space<vmem>>, %arg6: memref<9x8x8xbf16, #tpu.memory_space<vmem>>, %arg7: memref<8x1xf32, #tpu.memory_space<vmem>>, %arg8: memref<8x1xf32, #tpu.memory_space<vmem>>, %arg9: memref<1x8x768xf32, #tpu.memory_space<vmem>>, %arg10: memref<8x1024xf32, #tpu.memory_space<vmem>>) attributes {dimension_semantics = [#tpu.dimension_semantics<parallel>], iteration_bounds = array<i64: 2>, scalar_prefetch = 0 : i64, scratch_operands = 1 : i64, tpu.core_type = #tpu.core_type<tc>, window_params = [{transform_indices = @transform_0, window_bounds = array<i64: 1, 8, 768>}, {pipeline_mode = #tpu.pipeline_mode<synchronous>, transform_indices = @transform_1, window_bounds = array<i64: 1, 768>}, {pipeline_mode = #tpu.pipeline_mode<synchronous>, transform_indices = @transform_2, window_bounds = array<i64: 9, 8, 8>}, {pipeline_mode = #tpu.pipeline_mode<synchronous>, transform_indices = @transform_3, window_bounds = array<i64: 8, 1>}, {pipeline_mode = #tpu.pipeline_mode<synchronous>, transform_indices = @transform_4, window_bounds = array<i64: 8, 1>}, {pipeline_mode = #tpu.pipeline_mode<synchronous>, transform_indices = @transform_5, window_bounds = array<i64: 9, 8, 8>}, {pipeline_mode = #tpu.pipeline_mode<synchronous>, transform_indices = @transform_6, window_bounds = array<i64: 8, 1>}, {pipeline_mode = #tpu.pipeline_mode<synchronous>, transform_indices = @transform_7, window_bounds = array<i64: 8, 1>}, {transform_indices = @transform_8, window_bounds = array<i64: 1, 8, 768>}]} {
    %cst = arith.constant 0.000000e+00 : f32
    %0 = vector.broadcast %cst : f32 to vector<8x128xf32>
    %c0 = arith.constant 0 : index
    %c0_0 = arith.constant 0 : index
    %1 = vector.load %arg10[%c0, %c0_0] : memref<8x1024xf32, #tpu.memory_space<vmem>>, vector<8x128xf32>
    tpu.vector_store %arg10[%c0, %c0_0], %0 {strides = array<i32>} : memref<8x1024xf32, #tpu.memory_space<vmem>>, vector<8x128xf32>,
    %cst_1 = arith.constant 0.000000e+00 : f32
    %2 = vector.broadcast %cst_1 : f32 to vector<8x128xf32>
    %c0_2 = arith.constant 0 : index
    %c896 = arith.constant 896 : index
    %3 = vector.load %arg10[%c0_2, %c896] : memref<8x1024xf32, #tpu.memory_space<vmem>>, vector<8x128xf32>
    tpu.vector_store %arg10[%c0_2, %c896], %2 {strides = array<i32>} : memref<8x1024xf32, #tpu.memory_space<vmem>>, vector<8x128xf32>,
    %c0_3 = arith.constant 0 : index
    %c0_4 = arith.constant 0 : index
    %c0_5 = arith.constant 0 : index
    %4 = vector.load %arg1[%c0_3, %c0_4, %c0_5] : memref<1x8x768xbf16, #tpu.memory_space<vmem>>, vector<1x8x768xbf16>
    %5 = vector.shape_cast %4 : vector<1x8x768xbf16> to vector<8x768xbf16>
    %c0_6 = arith.constant 0 : index
    %c0_7 = arith.constant 0 : index
    %6 = vector.load %arg2[%c0_6, %c0_7] : memref<1x768xf32, #tpu.memory_space<vmem>>, vector<1x768xf32>
    %7 = arith.extf %5 : vector<8x768xbf16> to vector<8x768xf32>
    %c0_8 = arith.constant 0 : index
    %c128 = arith.constant 128 : index
    %8 = vector.load %arg10[%c0_8, %c128] : memref<8x1024xf32, #tpu.memory_space<vmem>>, vector<8x768xf32>
    tpu.vector_store %arg10[%c0_8, %c128], %7 {strides = array<i32>} : memref<8x1024xf32, #tpu.memory_space<vmem>>, vector<8x768xf32>,
    %c0_9 = arith.constant 0 : index
    %c109 = arith.constant 109 : index
    %9 = vector.load %arg10[%c0_9, %c109] : memref<8x1024xf32, #tpu.memory_space<vmem>>, vector<8x768xf32>
    %10 = arith.truncf %9 : vector<8x768xf32> to vector<8x768xbf16>
    %c0_10 = arith.constant 0 : index
    %c0_11 = arith.constant 0 : index
    %c0_12 = arith.constant 0 : index
    %11 = vector.load %arg3[%c0_10, %c0_11, %c0_12] : memref<9x8x8xbf16, #tpu.memory_space<vmem>>, vector<1x8x8xbf16>
    %12 = vector.shape_cast %11 : vector<1x8x8xbf16> to vector<8x8xbf16>
    %cst_13 = arith.constant dense<0.000000e+00> : vector<8x768xf32>
    %13 = tpu.matmul %12, %10, %cst_13 {dimension_numbers = #tpu.dot_dimension_numbers<[1], [0], [0], [1], [0, 0, 1, 1], [], []>} : vector<8x8xbf16>, vector<8x768xbf16>, vector<8x768xf32> -> vector<8x768xf32>
    %c0_14 = arith.constant 0 : index
    %c110 = arith.constant 110 : index
    %14 = vector.load %arg10[%c0_14, %c110] : memref<8x1024xf32, #tpu.memory_space<vmem>>, vector<8x768xf32>
    %15 = arith.truncf %14 : vector<8x768xf32> to vector<8x768xbf16>
    %c1 = arith.constant 1 : index
    %c0_15 = arith.constant 0 : index
    %c0_16 = arith.constant 0 : index
    %16 = vector.load %arg3[%c1, %c0_15, %c0_16] : memref<9x8x8xbf16, #tpu.memory_space<vmem>>, vector<1x8x8xbf16>
    %17 = vector.shape_cast %16 : vector<1x8x8xbf16> to vector<8x8xbf16>
    %cst_17 = arith.constant dense<0.000000e+00> : vector<8x768xf32>
    %18 = tpu.matmul %17, %15, %cst_17 {dimension_numbers = #tpu.dot_dimension_numbers<[1], [0], [0], [1], [0, 0, 1, 1], [], []>} : vector<8x8xbf16>, vector<8x768xbf16>, vector<8x768xf32> -> vector<8x768xf32>
    %19 = arith.addf %13, %18 : vector<8x768xf32>
    %c0_18 = arith.constant 0 : index
    %c111 = arith.constant 111 : index
    %20 = vector.load %arg10[%c0_18, %c111] : memref<8x1024xf32, #tpu.memory_space<vmem>>, vector<8x768xf32>
    %21 = arith.truncf %20 : vector<8x768xf32> to vector<8x768xbf16>
    %c2 = arith.constant 2 : index
    %c0_19 = arith.constant 0 : index
    %c0_20 = arith.constant 0 : index
    %22 = vector.load %arg3[%c2, %c0_19, %c0_20] : memref<9x8x8xbf16, #tpu.memory_space<vmem>>, vector<1x8x8xbf16>
    %23 = vector.shape_cast %22 : vector<1x8x8xbf16> to vector<8x8xbf16>
    %cst_21 = arith.constant dense<0.000000e+00> : vector<8x768xf32>
    %24 = tpu.matmul %23, %21, %cst_21 {dimension_numbers = #tpu.dot_dimension_numbers<[1], [0], [0], [1], [0, 0, 1, 1], [], []>} : vector<8x8xbf16>, vector<8x768xbf16>, vector<8x768xf32> -> vector<8x768xf32>
    %25 = arith.addf %19, %24 : vector<8x768xf32>
    %c0_22 = arith.constant 0 : index
    %c127 = arith.constant 127 : index
    %26 = vector.load %arg10[%c0_22, %c127] : memref<8x1024xf32, #tpu.memory_space<vmem>>, vector<8x768xf32>
    %27 = arith.truncf %26 : vector<8x768xf32> to vector<8x768xbf16>
    %c3 = arith.constant 3 : index
    %c0_23 = arith.constant 0 : index
    %c0_24 = arith.constant 0 : index
    %28 = vector.load %arg3[%c3, %c0_23, %c0_24] : memref<9x8x8xbf16, #tpu.memory_space<vmem>>, vector<1x8x8xbf16>
    %29 = vector.shape_cast %28 : vector<1x8x8xbf16> to vector<8x8xbf16>
    %cst_25 = arith.constant dense<0.000000e+00> : vector<8x768xf32>
    %30 = tpu.matmul %29, %27, %cst_25 {dimension_numbers = #tpu.dot_dimension_numbers<[1], [0], [0], [1], [0, 0, 1, 1], [], []>} : vector<8x8xbf16>, vector<8x768xbf16>, vector<8x768xf32> -> vector<8x768xf32>
    %31 = arith.addf %25, %30 : vector<8x768xf32>
    %c0_26 = arith.constant 0 : index
    %c128_27 = arith.constant 128 : index
    %32 = vector.load %arg10[%c0_26, %c128_27] : memref<8x1024xf32, #tpu.memory_space<vmem>>, vector<8x768xf32>
    %33 = arith.truncf %32 : vector<8x768xf32> to vector<8x768xbf16>
    %c4 = arith.constant 4 : index
    %c0_28 = arith.constant 0 : index
    %c0_29 = arith.constant 0 : index
    %34 = vector.load %arg3[%c4, %c0_28, %c0_29] : memref<9x8x8xbf16, #tpu.memory_space<vmem>>, vector<1x8x8xbf16>
    %35 = vector.shape_cast %34 : vector<1x8x8xbf16> to vector<8x8xbf16>
    %cst_30 = arith.constant dense<0.000000e+00> : vector<8x768xf32>
    %36 = tpu.matmul %35, %33, %cst_30 {dimension_numbers = #tpu.dot_dimension_numbers<[1], [0], [0], [1], [0, 0, 1, 1], [], []>} : vector<8x8xbf16>, vector<8x768xbf16>, vector<8x768xf32> -> vector<8x768xf32>
    %37 = arith.addf %31, %36 : vector<8x768xf32>
    %c0_31 = arith.constant 0 : index
    %c129 = arith.constant 129 : index
    %38 = vector.load %arg10[%c0_31, %c129] : memref<8x1024xf32, #tpu.memory_space<vmem>>, vector<8x768xf32>
    %39 = arith.truncf %38 : vector<8x768xf32> to vector<8x768xbf16>
    %c5 = arith.constant 5 : index
    %c0_32 = arith.constant 0 : index
    %c0_33 = arith.constant 0 : index
    %40 = vector.load %arg3[%c5, %c0_32, %c0_33] : memref<9x8x8xbf16, #tpu.memory_space<vmem>>, vector<1x8x8xbf16>
    %41 = vector.shape_cast %40 : vector<1x8x8xbf16> to vector<8x8xbf16>
    %cst_34 = arith.constant dense<0.000000e+00> : vector<8x768xf32>
    %42 = tpu.matmul %41, %39, %cst_34 {dimension_numbers = #tpu.dot_dimension_numbers<[1], [0], [0], [1], [0, 0, 1, 1], [], []>} : vector<8x8xbf16>, vector<8x768xbf16>, vector<8x768xf32> -> vector<8x768xf32>
    %43 = arith.addf %37, %42 : vector<8x768xf32>
    %c0_35 = arith.constant 0 : index
    %c145 = arith.constant 145 : index
    %44 = vector.load %arg10[%c0_35, %c145] : memref<8x1024xf32, #tpu.memory_space<vmem>>, vector<8x768xf32>
    %45 = arith.truncf %44 : vector<8x768xf32> to vector<8x768xbf16>
    %c6 = arith.constant 6 : index
    %c0_36 = arith.constant 0 : index
    %c0_37 = arith.constant 0 : index
    %46 = vector.load %arg3[%c6, %c0_36, %c0_37] : memref<9x8x8xbf16, #tpu.memory_space<vmem>>, vector<1x8x8xbf16>
    %47 = vector.shape_cast %46 : vector<1x8x8xbf16> to vector<8x8xbf16>
    %cst_38 = arith.constant dense<0.000000e+00> : vector<8x768xf32>
    %48 = tpu.matmul %47, %45, %cst_38 {dimension_numbers = #tpu.dot_dimension_numbers<[1], [0], [0], [1], [0, 0, 1, 1], [], []>} : vector<8x8xbf16>, vector<8x768xbf16>, vector<8x768xf32> -> vector<8x768xf32>
    %49 = arith.addf %43, %48 : vector<8x768xf32>
    %c0_39 = arith.constant 0 : index
    %c146 = arith.constant 146 : index
    %50 = vector.load %arg10[%c0_39, %c146] : memref<8x1024xf32, #tpu.memory_space<vmem>>, vector<8x768xf32>
    %51 = arith.truncf %50 : vector<8x768xf32> to vector<8x768xbf16>
    %c7 = arith.constant 7 : index
    %c0_40 = arith.constant 0 : index
    %c0_41 = arith.constant 0 : index
    %52 = vector.load %arg3[%c7, %c0_40, %c0_41] : memref<9x8x8xbf16, #tpu.memory_space<vmem>>, vector<1x8x8xbf16>
    %53 = vector.shape_cast %52 : vector<1x8x8xbf16> to vector<8x8xbf16>
    %cst_42 = arith.constant dense<0.000000e+00> : vector<8x768xf32>
    %54 = tpu.matmul %53, %51, %cst_42 {dimension_numbers = #tpu.dot_dimension_numbers<[1], [0], [0], [1], [0, 0, 1, 1], [], []>} : vector<8x8xbf16>, vector<8x768xbf16>, vector<8x768xf32> -> vector<8x768xf32>
    %55 = arith.addf %49, %54 : vector<8x768xf32>
    %c0_43 = arith.constant 0 : index
    %c147 = arith.constant 147 : index
    %56 = vector.load %arg10[%c0_43, %c147] : memref<8x1024xf32, #tpu.memory_space<vmem>>, vector<8x768xf32>
    %57 = arith.truncf %56 : vector<8x768xf32> to vector<8x768xbf16>
    %c8 = arith.constant 8 : index
    %c0_44 = arith.constant 0 : index
    %c0_45 = arith.constant 0 : index
    %58 = vector.load %arg3[%c8, %c0_44, %c0_45] : memref<9x8x8xbf16, #tpu.memory_space<vmem>>, vector<1x8x8xbf16>
    %59 = vector.shape_cast %58 : vector<1x8x8xbf16> to vector<8x8xbf16>
    %cst_46 = arith.constant dense<0.000000e+00> : vector<8x768xf32>
    %60 = tpu.matmul %59, %57, %cst_46 {dimension_numbers = #tpu.dot_dimension_numbers<[1], [0], [0], [1], [0, 0, 1, 1], [], []>} : vector<8x8xbf16>, vector<8x768xbf16>, vector<8x768xf32> -> vector<8x768xf32>
    %61 = arith.addf %55, %60 : vector<8x768xf32>
    %c0_47 = arith.constant 0 : index
    %c0_48 = arith.constant 0 : index
    %62 = vector.load %arg4[%c0_47, %c0_48] : memref<8x1xf32, #tpu.memory_space<vmem>>, vector<8x1xf32>
    %63 = vector.broadcast %62 : vector<8x1xf32> to vector<8x768xf32>
    %64 = arith.mulf %61, %63 : vector<8x768xf32>
    %c0_49 = arith.constant 0 : index
    %c0_50 = arith.constant 0 : index
    %65 = vector.load %arg5[%c0_49, %c0_50] : memref<8x1xf32, #tpu.memory_space<vmem>>, vector<8x1xf32>
    %66 = vector.broadcast %65 : vector<8x1xf32> to vector<8x768xf32>
    %67 = arith.addf %64, %66 : vector<8x768xf32>
    %cst_51 = arith.constant 0.000000e+00 : f32
    %68 = vector.broadcast %cst_51 : f32 to vector<8x768xf32>
    %69 = arith.maximumf %67, %68 : vector<8x768xf32>
    %70 = vector.broadcast %6 : vector<1x768xf32> to vector<8x768xf32>
    %71 = arith.mulf %69, %70 : vector<8x768xf32>
    %c0_52 = arith.constant 0 : index
    %c128_53 = arith.constant 128 : index
    %72 = vector.load %arg10[%c0_52, %c128_53] : memref<8x1024xf32, #tpu.memory_space<vmem>>, vector<8x768xf32>
    tpu.vector_store %arg10[%c0_52, %c128_53], %71 {strides = array<i32>} : memref<8x1024xf32, #tpu.memory_space<vmem>>, vector<8x768xf32>,
    %c0_54 = arith.constant 0 : index
    %c109_55 = arith.constant 109 : index
    %73 = vector.load %arg10[%c0_54, %c109_55] : memref<8x1024xf32, #tpu.memory_space<vmem>>, vector<8x768xf32>
    %74 = arith.truncf %73 : vector<8x768xf32> to vector<8x768xbf16>
    %c0_56 = arith.constant 0 : index
    %c0_57 = arith.constant 0 : index
    %c0_58 = arith.constant 0 : index
    %75 = vector.load %arg6[%c0_56, %c0_57, %c0_58] : memref<9x8x8xbf16, #tpu.memory_space<vmem>>, vector<1x8x8xbf16>
    %76 = vector.shape_cast %75 : vector<1x8x8xbf16> to vector<8x8xbf16>
    %cst_59 = arith.constant dense<0.000000e+00> : vector<8x768xf32>
    %77 = tpu.matmul %76, %74, %cst_59 {dimension_numbers = #tpu.dot_dimension_numbers<[1], [0], [0], [1], [0, 0, 1, 1], [], []>} : vector<8x8xbf16>, vector<8x768xbf16>, vector<8x768xf32> -> vector<8x768xf32>
    %c0_60 = arith.constant 0 : index
    %c110_61 = arith.constant 110 : index
    %78 = vector.load %arg10[%c0_60, %c110_61] : memref<8x1024xf32, #tpu.memory_space<vmem>>, vector<8x768xf32>
    %79 = arith.truncf %78 : vector<8x768xf32> to vector<8x768xbf16>
    %c1_62 = arith.constant 1 : index
    %c0_63 = arith.constant 0 : index
    %c0_64 = arith.constant 0 : index
    %80 = vector.load %arg6[%c1_62, %c0_63, %c0_64] : memref<9x8x8xbf16, #tpu.memory_space<vmem>>, vector<1x8x8xbf16>
    %81 = vector.shape_cast %80 : vector<1x8x8xbf16> to vector<8x8xbf16>
    %cst_65 = arith.constant dense<0.000000e+00> : vector<8x768xf32>
    %82 = tpu.matmul %81, %79, %cst_65 {dimension_numbers = #tpu.dot_dimension_numbers<[1], [0], [0], [1], [0, 0, 1, 1], [], []>} : vector<8x8xbf16>, vector<8x768xbf16>, vector<8x768xf32> -> vector<8x768xf32>
    %83 = arith.addf %77, %82 : vector<8x768xf32>
    %c0_66 = arith.constant 0 : index
    %c111_67 = arith.constant 111 : index
    %84 = vector.load %arg10[%c0_66, %c111_67] : memref<8x1024xf32, #tpu.memory_space<vmem>>, vector<8x768xf32>
    %85 = arith.truncf %84 : vector<8x768xf32> to vector<8x768xbf16>
    %c2_68 = arith.constant 2 : index
    %c0_69 = arith.constant 0 : index
    %c0_70 = arith.constant 0 : index
    %86 = vector.load %arg6[%c2_68, %c0_69, %c0_70] : memref<9x8x8xbf16, #tpu.memory_space<vmem>>, vector<1x8x8xbf16>
    %87 = vector.shape_cast %86 : vector<1x8x8xbf16> to vector<8x8xbf16>
    %cst_71 = arith.constant dense<0.000000e+00> : vector<8x768xf32>
    %88 = tpu.matmul %87, %85, %cst_71 {dimension_numbers = #tpu.dot_dimension_numbers<[1], [0], [0], [1], [0, 0, 1, 1], [], []>} : vector<8x8xbf16>, vector<8x768xbf16>, vector<8x768xf32> -> vector<8x768xf32>
    %89 = arith.addf %83, %88 : vector<8x768xf32>
    %c0_72 = arith.constant 0 : index
    %c127_73 = arith.constant 127 : index
    %90 = vector.load %arg10[%c0_72, %c127_73] : memref<8x1024xf32, #tpu.memory_space<vmem>>, vector<8x768xf32>
    %91 = arith.truncf %90 : vector<8x768xf32> to vector<8x768xbf16>
    %c3_74 = arith.constant 3 : index
    %c0_75 = arith.constant 0 : index
    %c0_76 = arith.constant 0 : index
    %92 = vector.load %arg6[%c3_74, %c0_75, %c0_76] : memref<9x8x8xbf16, #tpu.memory_space<vmem>>, vector<1x8x8xbf16>
    %93 = vector.shape_cast %92 : vector<1x8x8xbf16> to vector<8x8xbf16>
    %cst_77 = arith.constant dense<0.000000e+00> : vector<8x768xf32>
    %94 = tpu.matmul %93, %91, %cst_77 {dimension_numbers = #tpu.dot_dimension_numbers<[1], [0], [0], [1], [0, 0, 1, 1], [], []>} : vector<8x8xbf16>, vector<8x768xbf16>, vector<8x768xf32> -> vector<8x768xf32>
    %95 = arith.addf %89, %94 : vector<8x768xf32>
    %c0_78 = arith.constant 0 : index
    %c128_79 = arith.constant 128 : index
    %96 = vector.load %arg10[%c0_78, %c128_79] : memref<8x1024xf32, #tpu.memory_space<vmem>>, vector<8x768xf32>
    %97 = arith.truncf %96 : vector<8x768xf32> to vector<8x768xbf16>
    %c4_80 = arith.constant 4 : index
    %c0_81 = arith.constant 0 : index
    %c0_82 = arith.constant 0 : index
    %98 = vector.load %arg6[%c4_80, %c0_81, %c0_82] : memref<9x8x8xbf16, #tpu.memory_space<vmem>>, vector<1x8x8xbf16>
    %99 = vector.shape_cast %98 : vector<1x8x8xbf16> to vector<8x8xbf16>
    %cst_83 = arith.constant dense<0.000000e+00> : vector<8x768xf32>
    %100 = tpu.matmul %99, %97, %cst_83 {dimension_numbers = #tpu.dot_dimension_numbers<[1], [0], [0], [1], [0, 0, 1, 1], [], []>} : vector<8x8xbf16>, vector<8x768xbf16>, vector<8x768xf32> -> vector<8x768xf32>
    %101 = arith.addf %95, %100 : vector<8x768xf32>
    %c0_84 = arith.constant 0 : index
    %c129_85 = arith.constant 129 : index
    %102 = vector.load %arg10[%c0_84, %c129_85] : memref<8x1024xf32, #tpu.memory_space<vmem>>, vector<8x768xf32>
    %103 = arith.truncf %102 : vector<8x768xf32> to vector<8x768xbf16>
    %c5_86 = arith.constant 5 : index
    %c0_87 = arith.constant 0 : index
    %c0_88 = arith.constant 0 : index
    %104 = vector.load %arg6[%c5_86, %c0_87, %c0_88] : memref<9x8x8xbf16, #tpu.memory_space<vmem>>, vector<1x8x8xbf16>
    %105 = vector.shape_cast %104 : vector<1x8x8xbf16> to vector<8x8xbf16>
    %cst_89 = arith.constant dense<0.000000e+00> : vector<8x768xf32>
    %106 = tpu.matmul %105, %103, %cst_89 {dimension_numbers = #tpu.dot_dimension_numbers<[1], [0], [0], [1], [0, 0, 1, 1], [], []>} : vector<8x8xbf16>, vector<8x768xbf16>, vector<8x768xf32> -> vector<8x768xf32>
    %107 = arith.addf %101, %106 : vector<8x768xf32>
    %c0_90 = arith.constant 0 : index
    %c145_91 = arith.constant 145 : index
    %108 = vector.load %arg10[%c0_90, %c145_91] : memref<8x1024xf32, #tpu.memory_space<vmem>>, vector<8x768xf32>
    %109 = arith.truncf %108 : vector<8x768xf32> to vector<8x768xbf16>
    %c6_92 = arith.constant 6 : index
    %c0_93 = arith.constant 0 : index
    %c0_94 = arith.constant 0 : index
    %110 = vector.load %arg6[%c6_92, %c0_93, %c0_94] : memref<9x8x8xbf16, #tpu.memory_space<vmem>>, vector<1x8x8xbf16>
    %111 = vector.shape_cast %110 : vector<1x8x8xbf16> to vector<8x8xbf16>
    %cst_95 = arith.constant dense<0.000000e+00> : vector<8x768xf32>
    %112 = tpu.matmul %111, %109, %cst_95 {dimension_numbers = #tpu.dot_dimension_numbers<[1], [0], [0], [1], [0, 0, 1, 1], [], []>} : vector<8x8xbf16>, vector<8x768xbf16>, vector<8x768xf32> -> vector<8x768xf32>
    %113 = arith.addf %107, %112 : vector<8x768xf32>
    %c0_96 = arith.constant 0 : index
    %c146_97 = arith.constant 146 : index
    %114 = vector.load %arg10[%c0_96, %c146_97] : memref<8x1024xf32, #tpu.memory_space<vmem>>, vector<8x768xf32>
    %115 = arith.truncf %114 : vector<8x768xf32> to vector<8x768xbf16>
    %c7_98 = arith.constant 7 : index
    %c0_99 = arith.constant 0 : index
    %c0_100 = arith.constant 0 : index
    %116 = vector.load %arg6[%c7_98, %c0_99, %c0_100] : memref<9x8x8xbf16, #tpu.memory_space<vmem>>, vector<1x8x8xbf16>
    %117 = vector.shape_cast %116 : vector<1x8x8xbf16> to vector<8x8xbf16>
    %cst_101 = arith.constant dense<0.000000e+00> : vector<8x768xf32>
    %118 = tpu.matmul %117, %115, %cst_101 {dimension_numbers = #tpu.dot_dimension_numbers<[1], [0], [0], [1], [0, 0, 1, 1], [], []>} : vector<8x8xbf16>, vector<8x768xbf16>, vector<8x768xf32> -> vector<8x768xf32>
    %119 = arith.addf %113, %118 : vector<8x768xf32>
    %c0_102 = arith.constant 0 : index
    %c147_103 = arith.constant 147 : index
    %120 = vector.load %arg10[%c0_102, %c147_103] : memref<8x1024xf32, #tpu.memory_space<vmem>>, vector<8x768xf32>
    %121 = arith.truncf %120 : vector<8x768xf32> to vector<8x768xbf16>
    %c8_104 = arith.constant 8 : index
    %c0_105 = arith.constant 0 : index
    %c0_106 = arith.constant 0 : index
    %122 = vector.load %arg6[%c8_104, %c0_105, %c0_106] : memref<9x8x8xbf16, #tpu.memory_space<vmem>>, vector<1x8x8xbf16>
    %123 = vector.shape_cast %122 : vector<1x8x8xbf16> to vector<8x8xbf16>
    %cst_107 = arith.constant dense<0.000000e+00> : vector<8x768xf32>
    %124 = tpu.matmul %123, %121, %cst_107 {dimension_numbers = #tpu.dot_dimension_numbers<[1], [0], [0], [1], [0, 0, 1, 1], [], []>} : vector<8x8xbf16>, vector<8x768xbf16>, vector<8x768xf32> -> vector<8x768xf32>
    %125 = arith.addf %119, %124 : vector<8x768xf32>
    %c0_108 = arith.constant 0 : index
    %c0_109 = arith.constant 0 : index
    %126 = vector.load %arg7[%c0_108, %c0_109] : memref<8x1xf32, #tpu.memory_space<vmem>>, vector<8x1xf32>
    %127 = vector.broadcast %126 : vector<8x1xf32> to vector<8x768xf32>
    %128 = arith.mulf %125, %127 : vector<8x768xf32>
    %c0_110 = arith.constant 0 : index
    %c0_111 = arith.constant 0 : index
    %129 = vector.load %arg8[%c0_110, %c0_111] : memref<8x1xf32, #tpu.memory_space<vmem>>, vector<8x1xf32>
    %130 = vector.broadcast %129 : vector<8x1xf32> to vector<8x768xf32>
    %131 = arith.addf %128, %130 : vector<8x768xf32>
    %132 = arith.addf %131, %7 : vector<8x768xf32>
    %cst_112 = arith.constant 0.000000e+00 : f32
    %133 = vector.broadcast %cst_112 : f32 to vector<8x768xf32>
    %134 = arith.maximumf %132, %133 : vector<8x768xf32>
    %c0_113 = arith.constant 0 : index
    %c0_114 = arith.constant 0 : index
    %c0_115 = arith.constant 0 : index
    %135 = vector.load %arg9[%c0_113, %c0_114, %c0_115] : memref<1x8x768xf32, #tpu.memory_space<vmem>>, vector<1x8x768xf32>
    %136 = vector.shape_cast %135 : vector<1x8x768xf32> to vector<8x768xf32>
    %137 = vector.shape_cast %134 : vector<8x768xf32> to vector<1x8x768xf32>
    tpu.vector_store %arg9[%c0_113, %c0_114, %c0_115], %137 {strides = array<i32>} : memref<1x8x768xf32, #tpu.memory_space<vmem>>, vector<1x8x768xf32>,
    return
  }
  func.func @transform_0(%arg0: i32) -> (i32, i32, i32) {
    %c0_i32 = arith.constant 0 : i32
    %c0_i32_0 = arith.constant 0 : i32
    %c0_i32_1 = arith.constant 0 : i32
    return %arg0, %c0_i32, %c0_i32_0 : i32, i32, i32
  }
  func.func @transform_1(%arg0: i32) -> (i32, i32) {
    %c0_i32 = arith.constant 0 : i32
    %c0_i32_0 = arith.constant 0 : i32
    %c0_i32_1 = arith.constant 0 : i32
    return %c0_i32, %c0_i32_0 : i32, i32
  }
  func.func @transform_2(%arg0: i32) -> (i32, i32, i32) {
    %c0_i32 = arith.constant 0 : i32
    %c0_i32_0 = arith.constant 0 : i32
    %c0_i32_1 = arith.constant 0 : i32
    %c0_i32_2 = arith.constant 0 : i32
    return %c0_i32, %c0_i32_0, %c0_i32_1 : i32, i32, i32
  }
  func.func @transform_3(%arg0: i32) -> (i32, i32) {
    %c0_i32 = arith.constant 0 : i32
    %c0_i32_0 = arith.constant 0 : i32
    %c0_i32_1 = arith.constant 0 : i32
    return %c0_i32, %c0_i32_0 : i32, i32
  }
  func.func @transform_4(%arg0: i32) -> (i32, i32) {
    %c0_i32 = arith.constant 0 : i32
    %c0_i32_0 = arith.constant 0 : i32
    %c0_i32_1 = arith.constant 0 : i32
    return %c0_i32, %c0_i32_0 : i32, i32
  }
  func.func @transform_5(%arg0: i32) -> (i32, i32, i32) {
    %c0_i32 = arith.constant 0 : i32
    %c0_i32_0 = arith.constant 0 : i32
    %c0_i32_1 = arith.constant 0 : i32
    %c0_i32_2 = arith.constant 0 : i32
    return %c0_i32, %c0_i32_0, %c0_i32_1 : i32, i32, i32
  }
  func.func @transform_6(%arg0: i32) -> (i32, i32) {
    %c0_i32 = arith.constant 0 : i32
    %c0_i32_0 = arith.constant 0 : i32
    %c0_i32_1 = arith.constant 0 : i32
    return %c0_i32, %c0_i32_0 : i32, i32
  }
  func.func @transform_7(%arg0: i32) -> (i32, i32) {
    %c0_i32 = arith.constant 0 : i32
    %c0_i32_0 = arith.constant 0 : i32
    %c0_i32_1 = arith.constant 0 : i32
    return %c0_i32, %c0_i32_0 : i32, i32
  }
  func.func @transform_8(%arg0: i32) -> (i32, i32, i32) {
    %c0_i32 = arith.constant 0 : i32
    %c0_i32_0 = arith.constant 0 : i32
    %c0_i32_1 = arith.constant 0 : i32
    return %arg0, %c0_i32, %c0_i32_0 : i32, i32, i32
  }
}

</mosaic_0001>

<bundles_post_ra>
// kernel: tpu_custom_call.1
= control target key start
LH: loop header
LB: loop body
LE: loop exit
PB: predicated region body
PF: predicated region fallthrough
CT: control target
= control target key end

     0   :  { %13 = vsyncpa [#allocation4], 0  ;;  %s4857_s0 = inlined_call_operand.vmem [shape: bf16[2,8,768], index: 0, kind: input, shape index: {}]   ;;  %s4858_s1 = inlined_call_operand.vmem [shape: f32[1,768], index: 1, kind: input, shape index: {}]   ;;  %s4859_s2 = inlined_call_operand.vmem [shape: bf16[9,8,8], index: 2, kind: input, shape index: {}]   ;;  %s4860_s3 = inlined_call_operand.vmem [shape: f32[8,1], index: 3, kind: input, shape index: {}]   ;;  %s4861_s4 = inlined_call_operand.vmem [shape: f32[8,1], index: 4, kind: input, shape index: {}]   ;;  %s4862_s5 = inlined_call_operand.vmem [shape: bf16[9,8,8], index: 5, kind: input, shape index: {}]   ;;  %s4863_s6 = inlined_call_operand.vmem [shape: f32[8,1], index: 6, kind: input, shape index: {}]   ;;  %s4864_s7 = inlined_call_operand.vmem [shape: f32[8,1], index: 7, kind: input, shape index: {}]   ;;  %s4865_s8 = inlined_call_operand.hbm [shape: f32[2,8,768], index: 8, kind: output, shape index: {}]  }
   0x1   :  { %15 = vsyncpa [#allocation4 + $0x1], 0  ;;  %s3955_s27 = smov 0   ;;  %s3957_s28 = smov 0  }
   0x2   :  { %s3959_s29 = smov 0   ;;  %s3961_s30 = smov 0  }
   0x3 LB: > { %s3976_s9 = sadd.s32 4294967295, %s3897_s30   ;;  %s3636_s10 = sadd.s32 4294967294, %s3897_s30   ;;  %s3897_s30 = sphi %s3961_s30, %s4871_s30   ;;  %s3893_s29 = sphi %s3959_s29, %s4870_s29   ;;  %s3889_s28 = sphi %s3957_s28, %s4869_s28   ;;  %s3885_s27 = sphi %s3955_s27, %s4868_s27  }
   0x4   : > { %s3980_s11 = sadd.s32 1, %s3897_s30   ;;  %s201_s12 = sadd.s32 1, %s3893_s29 }
   0x5   : > { %s198_s13 = ssub.s32 %s3897_s30, %s3980_s11  ;;  %p211_p0 = scmp.ne.s32.totalorder %s3893_s29, %s3889_s28 }
   0x6   : > { %p199_p1 = scmp.eq.s32.totalorder %s198_s13, 0  ;;  %p212_p2 = scmp.eq.s32.totalorder %s3976_s9, 1 }
   0x7   : > { %p217_p3 = scmp.ne.s32.totalorder %s3889_s28, %s3885_s27  ;;  %p218_p4 = scmp.eq.s32.totalorder %s3636_s10, 1 }
   0x8   : > { %s3991_s14 = scalar_select %p199_p1, %s3893_s29, %s201_s12  }
   0x9   : > { %p3993_p5 = por %p212_p2, %p211_p0  ;;  %p3997_p6 = por %p218_p4, %p217_p3 }
   0xa   : > { %p3639_p7 = scmp.ge.s32.totalorder %s3897_s30, 1  ;;  %p265_p8 = scmp.lt.s32.totalorder %s3897_s30, 3 }
   0xc   : > { %p266_p9 = pnand %p3639_p7, %p265_p8 }
   0xd   : > { %p299_p10 = scmp.lt.s32.totalorder (!%p266_p9), %s3976_s9, 1  ;;  %s3900_s17 = smov (!%p266_p9), 18  }
   0xe   : > { %269 = sbr.rel (%p266_p9) target bundleno = 903 (0x387), region = 52  ;;  %s3902_s23 = smov (!%p266_p9), 19  }
   0xf   : > { %s3903_s24 = smov (!%p266_p9), 17   ;;  %s3904_s25 = smov (!%p266_p9), 1  }
  0x10   : > { %s3905_s26 = smov (!%p266_p9), 127   ;;  %s3906_s10 = smov (!%p266_p9), 111  }
  0x11   : > { %s3907_s12 = smov (!%p266_p9), 110   ;;  %s3908_s13 = smov (!%p266_p9), 109  }
  0x12   : > { %s296_s20 = sand.u32 (!%p266_p9), 1, %s3889_s28  }
  0x13   : > { %v3899_v0 = vmov 0.0|0.0   ;;  %s300_s18 = scalar_select %p299_p10, %s3976_s9, 1  ;;  %v3901_v1 = vmov 0   ;;  %v1890_v11 = vld [vmem:[%s4860_s3] sm:$0xff]  ;;  %vm361_vm0 = vcmask 146432   ;;  %vm372_vm1 = vcmask 1043456  }
  0x14   : > { %347 = vrot.lane.b32.xlu0 %v3899_v0, %s3900_s17  ;;  %423 = vmatprep.mubr.bf16.mxu0 %v3901_v1  ;;  %v1902_v13 = vld [vmem:[%s4861_s4] sm:$0xff]  ;;  %vm368_vm2 = vcmask 64512   ;;  %vm528_vm3 = vcmask 154624   ;;  %vm695_vm4 = vcmask 138240   ;;  %v3654_v53 = vld [vmem:[%s4859_s2 + $0x8] sm:$0xf] }
  0x15   : > { %464 = vmatprep.mubr.bf16.mxu1 %v3901_v1  ;;  %s3775_s19 = smul.u32 24, %s300_s18  ;;  %3826 = vset.pattern.permute.xlu0 %v3901_v1  ;;  %v3641_v19 = vld [vmem:[%s4859_s2 + $0x4] sm:$0xf]  ;;  %v337_v38 = vld [vmem:[%s4859_s2] sm:$0xf]  ;;  %vm868_vm5 = vcmask 7168  }
  0x16   : > { %3827 = vset.pattern.permute.xlu1 %v3901_v1  ;;  %vm1214_vm6 = vcmask 1039360   ;;  %vm1387_vm7 = vcmask 908288   ;;  %vm1560_vm8 = vcmask 900096   ;;  %vm1733_vm9 = vcmask 891904   ;;  %s4795_s21 = smul.u32 48, %s296_s20 }
  0x17   : > { %s4014_s22 = scalar_lea.vmem %s4857_s0, %s3775_s19 }
  0x18   : > { %v307_v2 = vld [vmem:[%s4014_s22] sm:$0xff]  ;;  %v308_v3 = vld [vmem:[%s4014_s22 + $0x8] sm:$0xff]  ;;  %v309_v8 = vld [vmem:[%s4014_s22 + $0x10] sm:$0xff] }
  0x19   : > { %v4018_v4 = vcombine.high %v307_v2, %v307_v2  ;;  %v4020_v5 = vcombine.low %v307_v2, %v307_v2  ;;  %v4026_v6 = vcombine.low %v308_v3, %v308_v3  ;;  %v4028_v7 = vcombine.high %v308_v3, %v308_v3 }
  0x1a   : > { %v4035_v9 = vcombine.low %v309_v8, %v309_v8  ;;  %v4037_v10 = vcombine.high %v309_v8, %v309_v8 }
  0x1b   : > { %351 = vrot.lane.b32.xlu1 %v4018_v4, %s3900_s17  ;;  %349 = vrot.lane.b32.xlu0 %v4020_v5, %s3900_s17 }
  0x1f   : > { %353 = vrot.lane.b32.xlu1 %v4026_v6, %s3900_s17  ;;  %355 = vrot.lane.b32.xlu0 %v4028_v7, %s3900_s17 }
  0x23   : > { %357 = vrot.lane.b32.xlu1 %v4035_v9, %s3900_s17  ;;  %359 = vrot.lane.b32.xlu0 %v4037_v10, %s3900_s17 }
  0x27   : > { %514 = vrot.lane.b32.xlu1 %v3899_v0, %s3902_s23  ;;  %516 = vrot.lane.b32.xlu0 %v4020_v5, %s3902_s23 }
  0x2b   : > { %518 = vrot.lane.b32.xlu1 %v4018_v4, %s3902_s23  ;;  %520 = vrot.lane.b32.xlu0 %v4026_v6, %s3902_s23 }
  0x2f   : > { %522 = vrot.lane.b32.xlu1 %v4028_v7, %s3902_s23  ;;  %524 = vrot.lane.b32.xlu0 %v4035_v9, %s3902_s23 }
  0x33   : > { %526 = vrot.lane.b32.xlu1 %v4037_v10, %s3902_s23  ;;  %681 = vrot.lane.b32.xlu0 %v3899_v0, %s3903_s24 }
  0x37   : > { %683 = vrot.lane.b32.xlu1 %v4020_v5, %s3903_s24  ;;  %685 = vrot.lane.b32.xlu0 %v4018_v4, %s3903_s24 }
  0x3b   : > { %687 = vrot.lane.b32.xlu1 %v4026_v6, %s3903_s24  ;;  %689 = vrot.lane.b32.xlu0 %v4028_v7, %s3903_s24 }
  0x3f   : > { %691 = vrot.lane.b32.xlu1 %v4035_v9, %s3903_s24  ;;  %693 = vrot.lane.b32.xlu0 %v4037_v10, %s3903_s24 }
  0x43   : > { %854 = vrot.lane.b32.xlu1 %v3899_v0, %s3904_s25  ;;  %856 = vrot.lane.b32.xlu0 %v4020_v5, %s3904_s25 }
  0x47   : > { %858 = vrot.lane.b32.xlu1 %v4018_v4, %s3904_s25  ;;  %860 = vrot.lane.b32.xlu0 %v4026_v6, %s3904_s25 }
  0x4b   : > { %862 = vrot.lane.b32.xlu1 %v4028_v7, %s3904_s25  ;;  %864 = vrot.lane.b32.xlu0 %v4035_v9, %s3904_s25 }
  0x4f   : > { %866 = vrot.lane.b32.xlu1 %v4037_v10, %s3904_s25  ;;  %1200 = vrot.lane.b32.xlu0 %v4020_v5, %s3905_s26 }
  0x53   : > { %1202 = vrot.lane.b32.xlu1 %v4018_v4, %s3905_s26  ;;  %1204 = vrot.lane.b32.xlu0 %v4026_v6, %s3905_s26 }
  0x57   : > { %1206 = vrot.lane.b32.xlu1 %v4028_v7, %s3905_s26  ;;  %1208 = vrot.lane.b32.xlu0 %v4035_v9, %s3905_s26 }
  0x5b   : > { %1210 = vrot.lane.b32.xlu1 %v4037_v10, %s3905_s26  ;;  %1212 = vrot.lane.b32.xlu0 %v3899_v0, %s3905_s26 }
  0x5f   : > { %1373 = vrot.lane.b32.xlu1 %v4020_v5, %s3906_s10  ;;  %1375 = vrot.lane.b32.xlu0 %v4018_v4, %s3906_s10 }
  0x63   : > { %1377 = vrot.lane.b32.xlu1 %v4026_v6, %s3906_s10  ;;  %1379 = vrot.lane.b32.xlu0 %v4028_v7, %s3906_s10 }
  0x67   : > { %1381 = vrot.lane.b32.xlu1 %v4035_v9, %s3906_s10  ;;  %1383 = vrot.lane.b32.xlu0 %v4037_v10, %s3906_s10 }
  0x6b   : > { %1385 = vrot.lane.b32.xlu1 %v3899_v0, %s3906_s10  ;;  %1546 = vrot.lane.b32.xlu0 %v4020_v5, %s3907_s12 }
  0x6f   : > { %1548 = vrot.lane.b32.xlu1 %v4018_v4, %s3907_s12  ;;  %1550 = vrot.lane.b32.xlu0 %v4026_v6, %s3907_s12 }
  0x73   : > { %1552 = vrot.lane.b32.xlu1 %v4028_v7, %s3907_s12  ;;  %1554 = vrot.lane.b32.xlu0 %v4035_v9, %s3907_s12 }
  0x77   : > { %1556 = vrot.lane.b32.xlu1 %v4037_v10, %s3907_s12  ;;  %1558 = vrot.lane.b32.xlu0 %v3899_v0, %s3907_s12 }
  0x7b   : > { %1719 = vrot.lane.b32.xlu1 %v4020_v5, %s3908_s13  ;;  %1721 = vrot.lane.b32.xlu0 %v4018_v4, %s3908_s13 }
  0x7f   : > { %1723 = vrot.lane.b32.xlu1 %v4026_v6, %s3908_s13  ;;  %1725 = vrot.lane.b32.xlu0 %v4028_v7, %s3908_s13 }
  0x83   : > { %1727 = vrot.lane.b32.xlu1 %v4035_v9, %s3908_s13  ;;  %1729 = vrot.lane.b32.xlu0 %v4037_v10, %s3908_s13 }
  0x86   : > { %v348_v12 = vpop.permute.xlu0 %347 }
  0x87   : > { %1731 = vrot.lane.b32.xlu1 %v3899_v0, %s3908_s13  ;;  %1893 = vperm.xlu0 %3826, %v1890_v11  }
  0x8b   : > { %1905 = vperm.xlu1 %3827, %v1902_v13   ;;  %2151 = vrot.lane.b32.xlu0 %v3899_v0, %s3902_s23 }
  0x8d   : > { %v352_v14 = vpop.permute.xlu1 %351  ;;  %v350_v15 = vpop.permute.xlu0 %349 }
  0x8e   : > { %v363_v16 = vsel %vm361_vm0, %v350_v15, %v352_v14  ;;  %v362_v17 = vsel %vm361_vm0, %v348_v12, %v350_v15 }
  0x8f   : > { %3642 = vmatprep.subr.msk.bf16.mxu0 %vm372_vm1, %v363_v16  ;;  %v374_v18 = vsel %vm372_vm1, %v362_v17, 0  ;;  %1987 = vrot.lane.b32.xlu1 %v3899_v0, %s3900_s17  ;;  %v3661_v16 = vld [vmem:[%s4859_s2 + $0xc] sm:$0xf] }
  0x90   : > { %406 = vmatpush1.bf16.msra.mxu0 %v374_v18 }
  0x91   : > { %v354_v20 = vpop.permute.xlu1 %353  ;;  %v356_v21 = vpop.permute.xlu0 %355 }
  0x92   : > { %v365_v22 = vsel %vm361_vm0, %v354_v20, %v356_v21  ;;  %v364_v23 = vsel %vm361_vm0, %v352_v14, %v354_v20 }
  0x93   : > { %3644 = vmatprep.subr.msk.bf16.mxu1 %vm372_vm1, %v365_v22  ;;  %v380_v24 = vsel %vm372_vm1, %v364_v23, 0  ;;  %3643 = vmatmul.mubr.msk.bf16.vlgmr.msra.gmra.mxu0 %vm368_vm2, %v3641_v19 }
  0x94   : > { %447 = vmatpush1.bf16.msra.mxu1 %v380_v24  ;;  %505 = vmatprep.mubr.bf16.mxu0 %v3901_v1  ;;  %v1031_v24 = vsel %vm372_vm1, %v4020_v5, 0 }
  0x95   : > { %v358_v25 = vpop.permute.xlu1 %357  ;;  %v360_v26 = vpop.permute.xlu0 %359 }
  0x96   : > { %v366_v27 = vsel %vm361_vm0, %v356_v21, %v358_v25  ;;  %v367_v28 = vsel %vm361_vm0, %v358_v25, %v360_v26 }
  0x97   : > { %3646 = vmatprep.subr.msk.bf16.mxu0 %vm372_vm1, %v367_v28  ;;  %v386_v29 = vsel %vm372_vm1, %v366_v27, 0  ;;  %3645 = vmatmul.mubr.msk.bf16.vlgmr.msra.gmra.mxu1 %vm368_vm2, %v3641_v19 }
  0x98   : > { %488 = vmatpush1.bf16.msra.mxu0 %v386_v29  ;;  %588 = vmatprep.mubr.bf16.mxu1 %v3901_v1  ;;  %v3668_v29 = vld [vmem:[%s4859_s2 + $0x10] sm:$0xf] }
  0x99   : > { %v515_v30 = vpop.permute.xlu1 %514  ;;  %v517_v31 = vpop.permute.xlu0 %516 }
  0x9a   : > { %v529_v32 = vsel %vm528_vm3, %v515_v30, %v517_v31 }
  0x9b   : > { %3647 = vmatmul.mubr.msk.bf16.vlgmr.msra.gmra.mxu0 %vm368_vm2, %v3641_v19  ;;  %v539_v36 = vsel %vm372_vm1, %v529_v32, 0 }
  0x9c   : > { %629 = vmatprep.mubr.bf16.mxu0 %v3901_v1 }
  0x9d   : > { %v519_v33 = vpop.permute.xlu1 %518  ;;  %v521_v34 = vpop.permute.xlu0 %520 }
  0x9e   : > { %v530_v35 = vsel %vm528_vm3, %v517_v31, %v519_v33  ;;  %v531_v37 = vsel %vm528_vm3, %v519_v33, %v521_v34 }
  0x9f   : > { %3648 = vmatprep.subr.msk.bf16.mxu1 %vm372_vm1, %v530_v35  ;;  %v545_v42 = vsel %vm372_vm1, %v531_v37, 0 }
  0xa0   : > { %571 = vmatpush1.bf16.msra.mxu1 %v539_v36 }
  0xa1   : > { %v523_v39 = vpop.permute.xlu1 %522  ;;  %v525_v40 = vpop.permute.xlu0 %524 }
  0xa2   : > { %v532_v41 = vsel %vm528_vm3, %v521_v34, %v523_v39  ;;  %v533_v43 = vsel %vm528_vm3, %v523_v39, %v525_v40 }
  0xa3   : > { %3649 = vmatmul.mubr.msk.bf16.vlgmr.msra.gmra.mxu1 %vm368_vm2, %v337_v38  ;;  %3650 = vmatprep.subr.msk.bf16.mxu0 %vm372_vm1, %v532_v41  ;;  %v551_v47 = vsel %vm372_vm1, %v533_v43, 0 }
  0xa4   : > { %612 = vmatpush1.bf16.msra.mxu0 %v545_v42  ;;  %670 = vmatprep.mubr.bf16.mxu1 %v3901_v1 }
  0xa5   : > { %v527_v44 = vpop.permute.xlu1 %526  ;;  %v682_v45 = vpop.permute.xlu0 %681 }
  0xa6   : > { %v534_v46 = vsel %vm528_vm3, %v525_v40, %v527_v44  ;;  %v3675_v40 = vld [vmem:[%s4859_s2 + $0x14] sm:$0xf] }
  0xa7   : > { %3651 = vmatmul.mubr.msk.bf16.vlgmr.msra.gmra.mxu0 %vm368_vm2, %v337_v38  ;;  %3652 = vmatprep.subr.msk.bf16.mxu1 %vm372_vm1, %v534_v46 }
  0xa8   : > { %653 = vmatpush1.bf16.msra.mxu1 %v551_v47  ;;  %755 = vmatprep.mubr.bf16.mxu0 %v3901_v1 }
  0xa9   : > { %v684_v48 = vpop.permute.xlu1 %683  ;;  %v686_v49 = vpop.permute.xlu0 %685 }
  0xaa   : > { %v696_v50 = vsel %vm695_vm4, %v682_v45, %v684_v48  ;;  %v697_v51 = vsel %vm695_vm4, %v684_v48, %v686_v49 }
  0xab   : > { %3653 = vmatmul.mubr.msk.bf16.vlgmr.msra.gmra.mxu1 %vm368_vm2, %v337_v38  ;;  %3655 = vmatprep.subr.msk.bf16.mxu0 %vm372_vm1, %v697_v51  ;;  %v706_v52 = vsel %vm372_vm1, %v696_v50, 0 }
  0xac   : > { %738 = vmatpush1.bf16.msra.mxu0 %v706_v52  ;;  %796 = vmatprep.mubr.bf16.mxu1 %v3901_v1 }
  0xad   : > { %v688_v54 = vpop.permute.xlu1 %687  ;;  %v690_v55 = vpop.permute.xlu0 %689 }
  0xae   : > { %v698_v56 = vsel %vm695_vm4, %v686_v49, %v688_v54  ;;  %v699_v57 = vsel %vm695_vm4, %v688_v54, %v690_v55 }
  0xaf   : > { %3656 = vmatmul.mubr.msk.bf16.vlgmr.msra.gmra.mxu0 %vm368_vm2, %v3654_v53  ;;  %3657 = vmatprep.subr.msk.bf16.mxu1 %vm372_vm1, %v699_v57  ;;  %v712_v58 = vsel %vm372_vm1, %v698_v56, 0  ;;  %v3682_v56 = vld [vmem:[%s4859_s2 + $0x18] sm:$0xf] }
  0xb0   : > { %779 = vmatpush1.bf16.msra.mxu1 %v712_v58  ;;  %837 = vmatprep.mubr.bf16.mxu0 %v3901_v1 }
  0xb1   : > { %v692_v59 = vpop.permute.xlu1 %691  ;;  %v694_v60 = vpop.permute.xlu0 %693 }
  0xb2   : > { %v700_v61 = vsel %vm695_vm4, %v690_v55, %v692_v59  ;;  %v701_v62 = vsel %vm695_vm4, %v692_v59, %v694_v60 }
  0xb3   : > { %v718_v63 = vsel %vm372_vm1, %v700_v61, 0  ;;  %3658 = vmatmul.mubr.msk.bf16.vlgmr.msra.gmra.mxu1 %vm368_vm2, %v3654_v53  ;;  %3659 = vmatprep.subr.msk.bf16.mxu0 %vm372_vm1, %v701_v62 }
  0xb4   : > { %820 = vmatpush1.bf16.msra.mxu0 %v718_v63  ;;  %928 = vmatprep.mubr.bf16.mxu1 %v3901_v1 }
  0xb5   : > { %v855_v2 = vpop.permute.xlu1 %854  ;;  %v857_v3 = vpop.permute.xlu0 %856 }
  0xb6   : > { %v869_v8 = vsel %vm868_vm5, %v855_v2, %v857_v3 }
  0xb7   : > { %3660 = vmatmul.mubr.msk.bf16.vlgmr.msra.gmra.mxu0 %vm368_vm2, %v3654_v53  ;;  %v879_v14 = vsel %vm372_vm1, %v869_v8, 0 }
  0xb8   : > { %969 = vmatprep.mubr.bf16.mxu0 %v3901_v1 }
  0xb9   : > { %v859_v11 = vpop.permute.xlu1 %858  ;;  %v861_v12 = vpop.permute.xlu0 %860 }
  0xba   : > { %v870_v13 = vsel %vm868_vm5, %v857_v3, %v859_v11  ;;  %v871_v15 = vsel %vm868_vm5, %v859_v11, %v861_v12 }
  0xbb   : > { %3662 = vmatprep.subr.msk.bf16.mxu1 %vm372_vm1, %v870_v13  ;;  %v885_v20 = vsel %vm372_vm1, %v871_v15, 0 }
  0xbc   : > { %911 = vmatpush1.bf16.msra.mxu1 %v879_v14 }
  0xbd   : > { %v863_v17 = vpop.permute.xlu1 %862  ;;  %v865_v18 = vpop.permute.xlu0 %864 }
  0xbe   : > { %v872_v19 = vsel %vm868_vm5, %v861_v12, %v863_v17  ;;  %v873_v21 = vsel %vm868_vm5, %v863_v17, %v865_v18 }
  0xbf   : > { %3663 = vmatmul.mubr.msk.bf16.vlgmr.msra.gmra.mxu1 %vm368_vm2, %v3661_v16  ;;  %3664 = vmatprep.subr.msk.bf16.mxu0 %vm372_vm1, %v872_v19  ;;  %v891_v26 = vsel %vm372_vm1, %v873_v21, 0 }
  0xc0   : > { %952 = vmatpush1.bf16.msra.mxu0 %v885_v20  ;;  %1010 = vmatprep.mubr.bf16.mxu1 %v3901_v1 }
  0xc1   : > { %v867_v22 = vpop.permute.xlu1 %866  ;;  %v1201_v23 = vpop.permute.xlu0 %1200  ;;  %3669 = vmatprep.subr.msk.bf16.mxu0 %vm372_vm1, %v4018_v4  ;;  %v1037_v4 = vsel %vm372_vm1, %v4026_v6, 0  ;;  %v1043_v6 = vsel %vm372_vm1, %v4035_v9, 0 }
  0xc2   : > { %v874_v25 = vsel %vm868_vm5, %v865_v18, %v867_v22 }
  0xc3   : > { %3665 = vmatmul.mubr.msk.bf16.vlgmr.msra.gmra.mxu0 %vm368_vm2, %v3661_v16  ;;  %3666 = vmatprep.subr.msk.bf16.mxu1 %vm372_vm1, %v874_v25 }
  0xc4   : > { %993 = vmatpush1.bf16.msra.mxu1 %v891_v26  ;;  %1063 = vmatpush1.bf16.msra.mxu0 %v1031_v24 }
  0xc5   : > { %v1203_v27 = vpop.permute.xlu1 %1202  ;;  %3671 = vmatprep.subr.msk.bf16.mxu1 %vm372_vm1, %v4028_v7  ;;  %v1205_v28 = vpop.permute.xlu0 %1204  ;;  %1080 = vmatprep.mubr.bf16.mxu0 %v3901_v1 }
  0xc6   : > { %v1216_v5 = vsel %vm1214_vm6, %v1203_v27, %v1205_v28  ;;  %3673 = vmatprep.subr.msk.bf16.mxu0 %vm372_vm1, %v4037_v10  ;;  %v1215_v10 = vsel %vm1214_vm6, %v1201_v23, %v1203_v27 }
  0xc7   : > { %3667 = vmatmul.mubr.msk.bf16.vlgmr.msra.gmra.mxu1 %vm368_vm2, %v3661_v16  ;;  %v1225_v35 = vsel %vm372_vm1, %v1215_v10, 0  ;;  %v3689_v16 = vld [vmem:[%s4859_s2 + $0x1c] sm:$0xf] }
  0xc8   : > { %1104 = vmatpush1.bf16.msra.mxu1 %v1037_v4  ;;  %1121 = vmatprep.mubr.bf16.mxu1 %v3901_v1 }
  0xc9   : > { %v1207_v7 = vpop.permute.xlu1 %1206  ;;  %3676 = vmatprep.subr.msk.bf16.mxu1 %vm372_vm1, %v1216_v5  ;;  %v1209_v30 = vpop.permute.xlu0 %1208 }
  0xca   : > { %v1218_v31 = vsel %vm1214_vm6, %v1207_v7, %v1209_v30  ;;  %v1217_v9 = vsel %vm1214_vm6, %v1205_v28, %v1207_v7 }
  0xcb   : > { %3670 = vmatmul.mubr.msk.bf16.vlgmr.msra.gmra.mxu0 %vm368_vm2, %v3668_v29  ;;  %v1231_v38 = vsel %vm372_vm1, %v1217_v9, 0 }
  0xcc   : > { %1145 = vmatpush1.bf16.msra.mxu0 %v1043_v6  ;;  %1162 = vmatprep.mubr.bf16.mxu0 %v3901_v1 }
  0xcd   : > { %v1211_v32 = vpop.permute.xlu1 %1210  ;;  %3678 = vmatprep.subr.msk.bf16.mxu0 %vm372_vm1, %v1218_v31  ;;  %v1213_v33 = vpop.permute.xlu0 %1212 }
  0xce   : > { %v1220_v34 = vsel %vm1214_vm6, %v1211_v32, %v1213_v33  ;;  %v1219_v39 = vsel %vm1214_vm6, %v1209_v30, %v1211_v32 }
  0xcf   : > { %3672 = vmatmul.mubr.msk.bf16.vlgmr.msra.gmra.mxu1 %vm368_vm2, %v3668_v29  ;;  %v1237_v44 = vsel %vm372_vm1, %v1219_v39, 0 }
  0xd0   : > { %1257 = vmatpush1.bf16.msra.mxu1 %v1225_v35  ;;  %1274 = vmatprep.mubr.bf16.mxu1 %v3901_v1 }
  0xd1   : > { %v1374_v36 = vpop.permute.xlu1 %1373  ;;  %3680 = vmatprep.subr.msk.bf16.mxu1 %vm372_vm1, %v1220_v34  ;;  %v1376_v37 = vpop.permute.xlu0 %1375 }
  0xd2   : > { %v1388_v45 = vsel %vm1387_vm7, %v1374_v36, %v1376_v37 }
  0xd3   : > { %3674 = vmatmul.mubr.msk.bf16.vlgmr.msra.gmra.mxu0 %vm368_vm2, %v3668_v29  ;;  %v1398_v49 = vsel %vm372_vm1, %v1388_v45, 0  ;;  %v3696_v29 = vld [vmem:[%s4859_s2 + $0x20] sm:$0xf] }
  0xd4   : > { %1298 = vmatpush1.bf16.msra.mxu0 %v1231_v38  ;;  %1315 = vmatprep.mubr.bf16.mxu0 %v3901_v1 }
  0xd5   : > { %v1378_v41 = vpop.permute.xlu1 %1377  ;;  %v1380_v42 = vpop.permute.xlu0 %1379 }
  0xd6   : > { %v1389_v43 = vsel %vm1387_vm7, %v1376_v37, %v1378_v41  ;;  %v1390_v50 = vsel %vm1387_vm7, %v1378_v41, %v1380_v42 }
  0xd7   : > { %3677 = vmatmul.mubr.msk.bf16.vlgmr.msra.gmra.mxu1 %vm368_vm2, %v3675_v40  ;;  %3683 = vmatprep.subr.msk.bf16.mxu0 %vm372_vm1, %v1389_v43  ;;  %v1404_v54 = vsel %vm372_vm1, %v1390_v50, 0 }
  0xd8   : > { %1339 = vmatpush1.bf16.msra.mxu1 %v1237_v44  ;;  %1356 = vmatprep.mubr.bf16.mxu1 %v3901_v1 }
  0xd9   : > { %v1382_v46 = vpop.permute.xlu1 %1381  ;;  %v1384_v47 = vpop.permute.xlu0 %1383 }
  0xda   : > { %v1391_v48 = vsel %vm1387_vm7, %v1380_v42, %v1382_v46  ;;  %v1392_v55 = vsel %vm1387_vm7, %v1382_v46, %v1384_v47 }
  0xdb   : > { %3679 = vmatmul.mubr.msk.bf16.vlgmr.msra.gmra.mxu0 %vm368_vm2, %v3675_v40  ;;  %3685 = vmatprep.subr.msk.bf16.mxu1 %vm372_vm1, %v1391_v48  ;;  %v1410_v61 = vsel %vm372_vm1, %v1392_v55, 0 }
  0xdc   : > { %1430 = vmatpush1.bf16.msra.mxu0 %v1398_v49  ;;  %1447 = vmatprep.mubr.bf16.mxu0 %v3901_v1 }
  0xdd   : > { %v1386_v51 = vpop.permute.xlu1 %1385  ;;  %v1547_v52 = vpop.permute.xlu0 %1546 }
  0xde   : > { %v1393_v53 = vsel %vm1387_vm7, %v1384_v47, %v1386_v51 }
  0xdf   : > { %3681 = vmatmul.mubr.msk.bf16.vlgmr.msra.gmra.mxu1 %vm368_vm2, %v3675_v40  ;;  %3687 = vmatprep.subr.msk.bf16.mxu0 %vm372_vm1, %v1393_v53 }
  0xe0   : > { %1471 = vmatpush1.bf16.msra.mxu1 %v1404_v54  ;;  %1488 = vmatprep.mubr.bf16.mxu1 %v3901_v1 }
  0xe1   : > { %v1549_v57 = vpop.permute.xlu1 %1548  ;;  %v1551_v58 = vpop.permute.xlu0 %1550 }
  0xe2   : > { %v1561_v59 = vsel %vm1560_vm8, %v1547_v52, %v1549_v57  ;;  %v1562_v60 = vsel %vm1560_vm8, %v1549_v57, %v1551_v58 }
  0xe3   : > { %3684 = vmatmul.mubr.msk.bf16.vlgmr.msra.gmra.mxu0 %vm368_vm2, %v3682_v56  ;;  %3690 = vmatprep.subr.msk.bf16.mxu1 %vm372_vm1, %v1562_v60  ;;  %v1571_v62 = vsel %vm372_vm1, %v1561_v59, 0 }
  0xe4   : > { %1512 = vmatpush1.bf16.msra.mxu0 %v1410_v61  ;;  %1529 = vmatprep.mubr.bf16.mxu0 %v3901_v1 }
  0xe5   : > { %v1553_v63 = vpop.permute.xlu1 %1552  ;;  %v1555_v2 = vpop.permute.xlu0 %1554 }
  0xe6   : > { %v1563_v3 = vsel %vm1560_vm8, %v1551_v58, %v1553_v63  ;;  %v1564_v8 = vsel %vm1560_vm8, %v1553_v63, %v1555_v2 }
  0xe7   : > { %3686 = vmatmul.mubr.msk.bf16.vlgmr.msra.gmra.mxu1 %vm368_vm2, %v3682_v56  ;;  %3692 = vmatprep.subr.msk.bf16.mxu0 %vm372_vm1, %v1564_v8  ;;  %v1577_v11 = vsel %vm372_vm1, %v1563_v3, 0 }
  0xe8   : > { %1603 = vmatpush1.bf16.msra.mxu1 %v1571_v62  ;;  %1620 = vmatprep.mubr.bf16.mxu1 %v3901_v1 }
  0xe9   : > { %v1557_v12 = vpop.permute.xlu1 %1556  ;;  %v1559_v13 = vpop.permute.xlu0 %1558 }
  0xea   : > { %v1565_v14 = vsel %vm1560_vm8, %v1555_v2, %v1557_v12  ;;  %v1566_v15 = vsel %vm1560_vm8, %v1557_v12, %v1559_v13 }
  0xeb   : > { %3688 = vmatmul.mubr.msk.bf16.vlgmr.msra.gmra.mxu0 %vm368_vm2, %v3682_v56  ;;  %3694 = vmatprep.subr.msk.bf16.mxu1 %vm372_vm1, %v1566_v15  ;;  %v1583_v17 = vsel %vm372_vm1, %v1565_v14, 0 }
  0xec   : > { %1644 = vmatpush1.bf16.msra.mxu0 %v1577_v11  ;;  %1661 = vmatprep.mubr.bf16.mxu0 %v3901_v1 }
  0xed   : > { %v1720_v18 = vpop.permute.xlu1 %1719  ;;  %v1722_v19 = vpop.permute.xlu0 %1721 }
  0xee   : > { %v1734_v20 = vsel %vm1733_vm9, %v1720_v18, %v1722_v19 }
  0xef   : > { %3691 = vmatmul.mubr.msk.bf16.vlgmr.msra.gmra.mxu1 %vm368_vm2, %v3689_v16  ;;  %v1744_v22 = vsel %vm372_vm1, %v1734_v20, 0 }
  0xf0   : > { %1685 = vmatpush1.bf16.msra.mxu1 %v1583_v17  ;;  %1702 = vmatprep.mubr.bf16.mxu1 %v3901_v1 }
  0xf1   : > { %v1724_v21 = vpop.permute.xlu1 %1723  ;;  %v1726_v23 = vpop.permute.xlu0 %1725 }
  0xf2   : > { %v1735_v24 = vsel %vm1733_vm9, %v1722_v19, %v1724_v21  ;;  %v1736_v25 = vsel %vm1733_vm9, %v1724_v21, %v1726_v23 }
  0xf3   : > { %3693 = vmatmul.mubr.msk.bf16.vlgmr.msra.gmra.mxu0 %vm368_vm2, %v3689_v16  ;;  %3697 = vmatprep.subr.msk.bf16.mxu0 %vm372_vm1, %v1735_v24  ;;  %v1750_v27 = vsel %vm372_vm1, %v1736_v25, 0 }
  0xf4   : > { %1776 = vmatpush1.bf16.msra.mxu0 %v1744_v22  ;;  %1793 = vmatprep.mubr.bf16.mxu0 %v3901_v1 }
  0xf5   : > { %v1728_v26 = vpop.permute.xlu1 %1727  ;;  %v1730_v28 = vpop.permute.xlu0 %1729 }
  0xf6   : > { %v1737_v4 = vsel %vm1733_vm9, %v1726_v23, %v1728_v26  ;;  %v1738_v5 = vsel %vm1733_vm9, %v1728_v26, %v1730_v28 }
  0xf7   : > { %3695 = vmatmul.mubr.msk.bf16.vlgmr.msra.gmra.mxu1 %vm368_vm2, %v3689_v16  ;;  %3699 = vmatprep.subr.msk.bf16.mxu1 %vm372_vm1, %v1737_v4  ;;  %v1756_v30 = vsel %vm372_vm1, %v1738_v5, 0 }
  0xf8   : > { %1817 = vmatpush1.bf16.msra.mxu1 %v1750_v27  ;;  %1834 = vmatprep.mubr.bf16.mxu1 %v3901_v1 }
  0xf9   : > { %v1732_v7 = vpop.permute.xlu1 %1731 }
  0xfa   : > { %v1739_v6 = vsel %vm1733_vm9, %v1730_v28, %v1732_v7 }
  0xfb   : > { %3698 = vmatmul.mubr.msk.bf16.vlgmr.msra.gmra.mxu0 %vm368_vm2, %v3696_v29  ;;  %3701 = vmatprep.subr.msk.bf16.mxu0 %vm372_vm1, %v1739_v6 }
  0xfc   : > { %1858 = vmatpush1.bf16.msra.mxu0 %v1756_v30  ;;  %1875 = vmatprep.mubr.bf16.mxu0 %v3901_v1 }
  0xff   : > { %3700 = vmatmul.mubr.msk.bf16.vlgmr.msra.gmra.mxu1 %vm368_vm2, %v3696_v29 }
 0x100   : > { %2060 = vmatprep.mubr.bf16.mxu1 %v3901_v1 }
 0x103   : > { %3702 = vmatmul.mubr.msk.bf16.vlgmr.msra.gmra.mxu0 %vm368_vm2, %v3696_v29 }
 0x104   : > { %2101 = vmatprep.mubr.bf16.mxu0 %v3901_v1 }
 0x153   : > { %v425_v31 = vpop.f32.mrf.mxu0 }
 0x155   : > { %v427_v10 = vpop.f32.mrf.mxu0 }
 0x157   : > { %v429_v32 = vpop.f32.mrf.mxu0  ;;  %v466_v33 = vpop.f32.mrf.mxu1 }
 0x159   : > { %v430_v34 = vpop.f32.mrf.mxu0  ;;  %v468_v35 = vpop.f32.mrf.mxu1 }
 0x15b   : > { %v470_v9 = vpop.f32.mrf.mxu1  ;;  %v507_v36 = vpop.f32.mrf.mxu0 }
 0x15d   : > { %v471_v37 = vpop.f32.mrf.mxu1  ;;  %v509_v38 = vpop.f32.mrf.mxu0 }
 0x15f   : > { %v511_v39 = vpop.f32.mrf.mxu0 }
 0x161   : > { %v512_v40 = vpop.f32.mrf.mxu0 }
 0x163   : > { %v590_v41 = vpop.f32.mrf.mxu1 }
 0x164   : > { %v591_v42 = vadd.f32 %v590_v41, %v425_v31 }
 0x165   : > { %v592_v43 = vpop.f32.mrf.mxu1 }
 0x166   : > { %v593_v44 = vadd.f32 %v592_v43, %v427_v10 }
 0x167   : > { %v594_v45 = vpop.f32.mrf.mxu1  ;;  %v631_v46 = vpop.f32.mrf.mxu0 }
 0x168   : > { %v632_v47 = vadd.f32 %v631_v46, %v466_v33 }
 0x169   : > { %v595_v48 = vpop.f32.mrf.mxu1  ;;  %v633_v49 = vpop.f32.mrf.mxu0 }
 0x16a   : > { %v634_v50 = vadd.f32 %v633_v49, %v468_v35 }
 0x16b   : > { %v635_v51 = vpop.f32.mrf.mxu0  ;;  %v672_v52 = vpop.f32.mrf.mxu1 }
 0x16c   : > { %v673_v53 = vadd.f32 %v672_v52, %v507_v36 }
 0x16d   : > { %v636_v54 = vpop.f32.mrf.mxu0  ;;  %v674_v55 = vpop.f32.mrf.mxu1 }
 0x16e   : > { %v675_v56 = vadd.f32 %v674_v55, %v509_v38 }
 0x16f   : > { %v676_v57 = vpop.f32.mrf.mxu1  ;;  %v757_v58 = vpop.f32.mrf.mxu0 }
 0x170   : > { %v4340_v59 = vadd.f32 %v757_v58, %v591_v42 }
 0x171   : > { %v677_v60 = vpop.f32.mrf.mxu1  ;;  %v759_v61 = vpop.f32.mrf.mxu0 }
 0x172   : > { %v4342_v62 = vadd.f32 %v759_v61, %v593_v44 }
 0x173   : > { %v761_v63 = vpop.f32.mrf.mxu0  ;;  %v798_v2 = vpop.f32.mrf.mxu1 }
 0x174   : > { %v4344_v3 = vadd.f32 %v798_v2, %v632_v47 }
 0x175   : > { %v762_v8 = vpop.f32.mrf.mxu0  ;;  %v800_v11 = vpop.f32.mrf.mxu1 }
 0x176   : > { %v4346_v12 = vadd.f32 %v800_v11, %v634_v50 }
 0x177   : > { %v802_v13 = vpop.f32.mrf.mxu1  ;;  %v839_v14 = vpop.f32.mrf.mxu0 }
 0x178   : > { %v4348_v15 = vadd.f32 %v839_v14, %v673_v53 }
 0x179   : > { %v803_v16 = vpop.f32.mrf.mxu1  ;;  %v841_v17 = vpop.f32.mrf.mxu0 }
 0x17a   : > { %v4350_v18 = vadd.f32 %v841_v17, %v675_v56  ;;  %v1921_v17 = vlaneseq }
 0x17b   : > { %v843_v19 = vpop.f32.mrf.mxu0 }
 0x17d   : > { %v844_v20 = vpop.f32.mrf.mxu0 }
 0x17f   : > { %v930_v21 = vpop.f32.mrf.mxu1 }
 0x180   : > { %v1019_v13 = vadd.f32 %v930_v21, %v4340_v59 }
 0x181   : > { %v932_v22 = vpop.f32.mrf.mxu1 }
 0x182   : > { %v1020_v19 = vadd.f32 %v932_v22, %v4342_v62 }
 0x183   : > { %v934_v23 = vpop.f32.mrf.mxu1  ;;  %v971_v24 = vpop.f32.mrf.mxu0 }
 0x185   : > { %v935_v25 = vpop.f32.mrf.mxu1  ;;  %v973_v26 = vpop.f32.mrf.mxu0 }
 0x187   : > { %v975_v27 = vpop.f32.mrf.mxu0  ;;  %v4352_v28 = vpop.f32.mrf.mxu1 }
 0x188   : > { %v1021_v27 = vadd.f32 %v971_v24, %v4344_v3  ;;  %v1023_v3 = vadd.f32 %v4352_v28, %v4348_v15 }
 0x189   : > { %v976_v4 = vpop.f32.mrf.mxu0  ;;  %v4354_v5 = vpop.f32.mrf.mxu1 }
 0x18b   : > { %v1016_v29 = vpop.f32.mrf.mxu1  ;;  %v1082_v7 = vpop.f32.mrf.mxu0 }
 0x18c   : > { %v1171_v20 = vadd.f32 %v1082_v7, %v1019_v13 }
 0x18d   : > { %v1017_v30 = vpop.f32.mrf.mxu1  ;;  %v1084_v6 = vpop.f32.mrf.mxu0 }
 0x18e   : > { %v1172_v4 = vadd.f32 %v1084_v6, %v1020_v19 }
 0x18f   : > { %v1086_v31 = vpop.f32.mrf.mxu0  ;;  %v1123_v10 = vpop.f32.mrf.mxu1 }
 0x191   : > { %v1087_v32 = vpop.f32.mrf.mxu0  ;;  %v1125_v33 = vpop.f32.mrf.mxu1 }
 0x192   : > { %v4369_v32 = vshrl.u32 %v1921_v17, 7 }
 0x193   : > { %v1127_v34 = vpop.f32.mrf.mxu1  ;;  %v4356_v35 = vpop.f32.mrf.mxu0 }
 0x194   : > { %v1022_v34 = vadd.f32 %v973_v26, %v4346_v12  ;;  %v1175_v15 = vadd.f32 %v4356_v35, %v1023_v3 }
 0x195   : > { %v1128_v9 = vpop.f32.mrf.mxu1  ;;  %v4358_v36 = vpop.f32.mrf.mxu0 }
 0x196   : > { %v1173_v9 = vadd.f32 %v1123_v10, %v1021_v27 }
 0x197   : > { %v1168_v37 = vpop.f32.mrf.mxu0  ;;  %v1276_v38 = vpop.f32.mrf.mxu1 }
 0x198   : > { %v1365_v29 = vadd.f32 %v1276_v38, %v1171_v20  ;;  %v1923_v38 = vsub.s32 0, %v4369_v32 }
 0x199   : > { %v1169_v39 = vpop.f32.mrf.mxu0  ;;  %v1278_v40 = vpop.f32.mrf.mxu1 }
 0x19a   : > { %v1366_v59 = vadd.f32 %v1278_v40, %v1172_v4  ;;  %v4382_v40 = vpop.permute.xlu1 %1905 }
 0x19b   : > { %v1280_v41 = vpop.f32.mrf.mxu1  ;;  %v1317_v42 = vpop.f32.mrf.mxu0 }
 0x19c   : > { %v1174_v41 = vadd.f32 %v1125_v33, %v1022_v34  ;;  %v1367_v62 = vadd.f32 %v1317_v42, %v1173_v9  ;;  %v4380_v33 = vld [vmem:[%s4858_s1] sm:$0x3f]  ;;  %v1024_v42 = vadd.f32 %v4354_v5, %v4350_v18  ;;  %v1931_v18 = vsub.s32 2, %v4369_v32 }
 0x19d   : > { %v1281_v43 = vpop.f32.mrf.mxu1  ;;  %v1319_v44 = vpop.f32.mrf.mxu0 }
 0x19e   : > { %v4372_v43 = vpop.permute.xlu0 %1893 }
 0x19f   : > { %v1321_v45 = vpop.f32.mrf.mxu0  ;;  %v4360_v46 = vpop.f32.mrf.mxu1 }
 0x1a0   : > { %v1368_v45 = vadd.f32 %v1319_v44, %v1174_v41 }
 0x1a1   : > { %v1322_v47 = vpop.f32.mrf.mxu0  ;;  %v4362_v48 = vpop.f32.mrf.mxu1 }
 0x1a3   : > { %v1362_v49 = vpop.f32.mrf.mxu1  ;;  %v1449_v50 = vpop.f32.mrf.mxu0 }
 0x1a4   : > { %v1538_v21 = vadd.f32 %v1449_v50, %v1365_v29  ;;  %v1927_v49 = vsub.s32 1, %v4369_v32 }
 0x1a5   : > { %v1363_v51 = vpop.f32.mrf.mxu1  ;;  %v1451_v52 = vpop.f32.mrf.mxu0 }
 0x1a6   : > { %v1539_v22 = vadd.f32 %v1451_v52, %v1366_v59 }
 0x1a7   : > { %v1453_v53 = vpop.f32.mrf.mxu0  ;;  %v1490_v54 = vpop.f32.mrf.mxu1 }
 0x1a8   : > { %v1540_v12 = vadd.f32 %v1490_v54, %v1367_v62  ;;  %v1176_v53 = vadd.f32 %v4358_v36, %v1024_v42  ;;  %v1369_v54 = vadd.f32 %v4360_v46, %v1175_v15  ;;  %v1935_v46 = vsub.s32 3, %v4369_v32 }
 0x1a9   : > { %v1454_v55 = vpop.f32.mrf.mxu0  ;;  %v1492_v56 = vpop.f32.mrf.mxu1 }
 0x1aa   : > { %v1541_v44 = vadd.f32 %v1492_v56, %v1368_v45  ;;  %v1924_v55 = vrot.slane %v4380_v33, %v1923_v38  ;;  %v1936_v9 = vrot.slane %v4380_v33, %v1935_v46 }
 0x1ab   : > { %v1494_v57 = vpop.f32.mrf.mxu1  ;;  %v1531_v58 = vpop.f32.mrf.mxu0 }
 0x1ad   : > { %v1495_v60 = vpop.f32.mrf.mxu1  ;;  %v4364_v61 = vpop.f32.mrf.mxu0 }
 0x1af   : > { %v1535_v63 = vpop.f32.mrf.mxu0  ;;  %v1622_v2 = vpop.f32.mrf.mxu1 }
 0x1b0   : > { %v1711_v7 = vadd.f32 %v1622_v2, %v1538_v21  ;;  %v1370_v2 = vadd.f32 %v4362_v48, %v1176_v53  ;;  %v1939_v21 = vsub.s32 4, %v4369_v32  ;;  %v3520_v53 = vld [vmem:[%s4863_s6] sm:$0xff] }
 0x1b1   : > { %v1536_v8 = vpop.f32.mrf.mxu0  ;;  %v1624_v11 = vpop.f32.mrf.mxu1 }
 0x1b2   : > { %v1712_v26 = vadd.f32 %v1624_v11, %v1539_v22  ;;  %v1542_v8 = vadd.f32 %v1531_v58, %v1369_v54  ;;  %v1928_v11 = vrot.slane %v4380_v33, %v1927_v49  ;;  %v1543_v20 = vadd.f32 %v4364_v61, %v1370_v2  ;;  %v1988_v54 = vpop.permute.xlu1 %1987  ;;  %v3703_v2 = vld [vmem:[%s4862_s5 + $0x4] sm:$0xf] }
 0x1b3   : > { %v1626_v14 = vpop.f32.mrf.mxu1  ;;  %v1663_v16 = vpop.f32.mrf.mxu0 }
 0x1b4   : > { %v1713_v50 = vadd.f32 %v1663_v16, %v1540_v12 }
 0x1b5   : > { %v1627_v23 = vpop.f32.mrf.mxu1  ;;  %v1665_v25 = vpop.f32.mrf.mxu0 }
 0x1b6   : > { %v1714_v5 = vadd.f32 %v1665_v25, %v1541_v44  ;;  %v1932_v25 = vrot.slane %v4380_v33, %v1931_v18 }
 0x1b7   : > { %v1667_v30 = vpop.f32.mrf.mxu0  ;;  %v1704_v31 = vpop.f32.mrf.mxu1 }
 0x1b8   : > { %v1715_v23 = vadd.f32 %v1704_v31, %v1542_v8 }
 0x1b9   : > { %v1668_v37 = vpop.f32.mrf.mxu0  ;;  %v1706_v39 = vpop.f32.mrf.mxu1 }
 0x1ba   : > { %v1716_v34 = vadd.f32 %v1706_v39, %v1543_v20 }
 0x1bb   : > { %v1708_v24 = vpop.f32.mrf.mxu1  ;;  %v1795_v6 = vpop.f32.mrf.mxu0 }
 0x1bc   : > { %v1884_v10 = vadd.f32 %v1795_v6, %v1711_v7  ;;  %v1943_v24 = vsub.s32 5, %v4369_v32  ;;  %v1940_v32 = vrot.slane %v4380_v33, %v1939_v21 }
 0x1bd   : > { %v1709_v28 = vpop.f32.mrf.mxu1  ;;  %v1797_v47 = vpop.f32.mrf.mxu0 }
 0x1be   : > { %v1896_v51 = vmul.f32 %v4372_v43, %v1884_v10  ;;  %v1885_v52 = vadd.f32 %v1797_v47, %v1712_v26  ;;  %v1944_v49 = vrot.slane %v4380_v33, %v1943_v24 }
 0x1bf   : > { %v1799_v57 = vpop.f32.mrf.mxu0  ;;  %v1836_v60 = vpop.f32.mrf.mxu1 }
 0x1c0   : > { %v1897_v35 = vmul.f32 %v4372_v43, %v1885_v52  ;;  %v1908_v63 = vadd.f32 %v4382_v40, %v1896_v51  ;;  %v1886_v56 = vadd.f32 %v1836_v60, %v1713_v50  ;;  %v3532_v52 = vld [vmem:[%s4864_s7] sm:$0xff] }
 0x1c1   : > { %v1800_v36 = vpop.f32.mrf.mxu0  ;;  %v1838_v13 = vpop.f32.mrf.mxu1 }
 0x1c2   : > { %v1909_v14 = vadd.f32 %v4382_v40, %v1897_v35  ;;  %v1914_v16 = vmax.f32 %v1908_v63, 0.0  ;;  %v1898_v17 = vmul.f32 %v4372_v43, %v1886_v56  ;;  %v1887_v19 = vadd.f32 %v1838_v13, %v1714_v5 }
 0x1c3   : > { %v1840_v27 = vpop.f32.mrf.mxu1  ;;  %v1877_v48 = vpop.f32.mrf.mxu0 }
 0x1c4   : > { %v1915_v58 = vmax.f32 %v1909_v14, 0.0  ;;  %v1951_v4 = vmul.f32 %v1924_v55, %v1914_v16  ;;  %v1910_v29 = vadd.f32 %v4382_v40, %v1898_v17  ;;  %v1899_v30 = vmul.f32 %v4372_v43, %v1887_v19  ;;  %v2152_v55 = vpop.permute.xlu0 %2151 }
 0x1c5   : > { %v1888_v59 = vadd.f32 %v1877_v48, %v1715_v23  ;;  %v1841_v37 = vpop.f32.mrf.mxu1  ;;  %v1879_v41 = vpop.f32.mrf.mxu0 }
 0x1c6   : > { %v1952_v61 = vmul.f32 %v1928_v11, %v1915_v58  ;;  %v4406_v31 = vpack.c.bf16 %v1951_v4, %v1951_v4  ;;  %v1916_v62 = vmax.f32 %v1910_v29, 0.0  ;;  %v1911_v22 = vadd.f32 %v4382_v40, %v1899_v30  ;;  %v1977_v30 = vld [vmem:[%s4862_s5] sm:$0xf] }
 0x1c7   : > { %v1900_v7 = vmul.f32 %v4372_v43, %v1888_v59  ;;  %v1889_v3 = vadd.f32 %v1879_v41, %v1716_v34  ;;  %v1881_v6 = vpop.f32.mrf.mxu0 }
 0x1c8   : > { %v1953_v39 = vmul.f32 %v1932_v25, %v1916_v62  ;;  %v1917_v38 = vmax.f32 %v1911_v22, 0.0  ;;  %2153 = vrot.lane.b32.xlu1 %v4406_v31, %s3902_s23  ;;  %1989 = vrot.lane.b32.xlu0 %v4406_v31, %s3900_s17  ;;  %v4417_v10 = vpack.c.bf16 %v1952_v61, %v1952_v61  ;;  %v3716_v6 = vld [vmem:[%s4862_s5 + $0x8] sm:$0xf] }
 0x1c9   : > { %v1912_v45 = vadd.f32 %v4382_v40, %v1900_v7  ;;  %v1901_v12 = vmul.f32 %v4372_v43, %v1889_v3  ;;  %v1882_v26 = vpop.f32.mrf.mxu0 }
 0x1ca   : > { %v4419_v42 = vpack.c.bf16 %v1953_v39, %v1953_v39  ;;  %v1954_v15 = vmul.f32 %v1936_v9, %v1917_v38 }
 0x1cb   : > { %v1918_v28 = vmax.f32 %v1912_v45, 0.0  ;;  %v1913_v47 = vadd.f32 %v4382_v40, %v1901_v12 }
 0x1cc   : > { %1993 = vrot.lane.b32.xlu0 %v4419_v42, %s3900_s17  ;;  %1991 = vrot.lane.b32.xlu1 %v4417_v10, %s3900_s17  ;;  %v4428_v44 = vpack.c.bf16 %v1954_v15, %v1954_v15 }
 0x1cd   : > { %v1919_v43 = vmax.f32 %v1913_v47, 0.0  ;;  %v1955_v50 = vmul.f32 %v1940_v32, %v1918_v28 }
 0x1cf   : > { %v1956_v51 = vmul.f32 %v1944_v49, %v1919_v43  ;;  %v4434_v40 = vpack.c.bf16 %v1955_v50, %v1955_v50 }
 0x1d0   : > { %2155 = vrot.lane.b32.xlu0 %v4417_v10, %s3902_s23  ;;  %1995 = vrot.lane.b32.xlu1 %v4428_v44, %s3900_s17 }
 0x1d1   : > { %v4436_v33 = vpack.c.bf16 %v1956_v51, %v1956_v51 }
 0x1d4   : > { %1997 = vrot.lane.b32.xlu0 %v4434_v40, %s3900_s17  ;;  %1999 = vrot.lane.b32.xlu1 %v4436_v33, %s3900_s17  ;;  %s4803_s17 = scalar_lea.vmem [#allocation3], %s4795_s21 }
 0x1d8   : > { %2159 = vrot.lane.b32.xlu0 %v4428_v44, %s3902_s23  ;;  %2157 = vrot.lane.b32.xlu1 %v4419_v42, %s3902_s23 }
 0x1dc   : > { %2319 = vrot.lane.b32.xlu0 %v4406_v31, %s3903_s24  ;;  %2161 = vrot.lane.b32.xlu1 %v4434_v40, %s3902_s23 }
 0x1e0   : > { %2323 = vrot.lane.b32.xlu0 %v4419_v42, %s3903_s24  ;;  %2317 = vrot.lane.b32.xlu1 %v3899_v0, %s3903_s24 }
 0x1e4   : > { %2163 = vrot.lane.b32.xlu0 %v4436_v33, %s3902_s23  ;;  %2321 = vrot.lane.b32.xlu1 %v4417_v10, %s3903_s24  ;;  %s3577_s23 = sshll.u32 %s4803_s17, 4  ;;  %s3578_s23 = int_to_ptr.vmem [resolvable:$true] %s3577_s23 }
 0x1e8   : > { %2327 = vrot.lane.b32.xlu0 %v4434_v40, %s3903_s24  ;;  %2325 = vrot.lane.b32.xlu1 %v4428_v44, %s3903_s24 }
 0x1ec   : > { %2489 = vrot.lane.b32.xlu0 %v3899_v0, %s3904_s25  ;;  %2329 = vrot.lane.b32.xlu1 %v4436_v33, %s3903_s24 }
 0x1f0   : > { %2493 = vrot.lane.b32.xlu0 %v4417_v10, %s3904_s25  ;;  %2491 = vrot.lane.b32.xlu1 %v4406_v31, %s3904_s25 }
 0x1f4   : > { %2497 = vrot.lane.b32.xlu0 %v4428_v44, %s3904_s25  ;;  %2495 = vrot.lane.b32.xlu1 %v4419_v42, %s3904_s25 }
 0x1f8   : > { %2501 = vrot.lane.b32.xlu0 %v4436_v33, %s3904_s25  ;;  %2499 = vrot.lane.b32.xlu1 %v4434_v40, %s3904_s25 }
 0x1fc   : > { %2836 = vrot.lane.b32.xlu0 %v4417_v10, %s3905_s26  ;;  %2834 = vrot.lane.b32.xlu1 %v4406_v31, %s3905_s26 }
 0x200   : > { %2840 = vrot.lane.b32.xlu0 %v4428_v44, %s3905_s26  ;;  %2838 = vrot.lane.b32.xlu1 %v4419_v42, %s3905_s26 }
 0x204   : > { %3006 = vrot.lane.b32.xlu0 %v4406_v31, %s3906_s10  ;;  %2842 = vrot.lane.b32.xlu1 %v4434_v40, %s3905_s26 }
 0x208   : > { %3010 = vrot.lane.b32.xlu0 %v4419_v42, %s3906_s10  ;;  %2846 = vrot.lane.b32.xlu1 %v3899_v0, %s3905_s26 }
 0x20c   : > { %3014 = vrot.lane.b32.xlu0 %v4434_v40, %s3906_s10  ;;  %3008 = vrot.lane.b32.xlu1 %v4417_v10, %s3906_s10 }
 0x210   : > { %2844 = vrot.lane.b32.xlu0 %v4436_v33, %s3905_s26  ;;  %3012 = vrot.lane.b32.xlu1 %v4428_v44, %s3906_s10 }
 0x214   : > { %3018 = vrot.lane.b32.xlu0 %v3899_v0, %s3906_s10  ;;  %3178 = vrot.lane.b32.xlu1 %v4406_v31, %s3907_s12 }
 0x218   : > { %3180 = vrot.lane.b32.xlu0 %v4417_v10, %s3907_s12  ;;  %3016 = vrot.lane.b32.xlu1 %v4436_v33, %s3906_s10  ;;  %s3837_s10 = scalar_lea.vmem %s3578_s23, 768 }
 0x219   : > { %p3838_p11 = scmp.ne.s32.totalorder %s3578_s23, %s3837_s10 }
 0x21b   : > { %p3839_p12 = pnand %p3838_p11, %p3993_p5 }
 0x21c   : > { %3184 = vrot.lane.b32.xlu0 %v4428_v44, %s3907_s12  ;;  %3182 = vrot.lane.b32.xlu1 %v4419_v42, %s3907_s12 }
 0x21d   : > { %p3840_p13 = pneg %p3839_p12 }
 0x220   : > { %3350 = vrot.lane.b32.xlu0 %v4406_v31, %s3908_s13  ;;  %3186 = vrot.lane.b32.xlu1 %v4434_v40, %s3907_s12 }
 0x224   : > { %3354 = vrot.lane.b32.xlu0 %v4419_v42, %s3908_s13  ;;  %3190 = vrot.lane.b32.xlu1 %v3899_v0, %s3907_s12 }
 0x228   : > { %3188 = vrot.lane.b32.xlu0 %v4436_v33, %s3907_s12  ;;  %3352 = vrot.lane.b32.xlu1 %v4417_v10, %s3908_s13  ;;  %s3909_s12 = smov [#allocation3]  }
 0x22c   : > { %3358 = vrot.lane.b32.xlu0 %v4434_v40, %s3908_s13  ;;  %3356 = vrot.lane.b32.xlu1 %v4428_v44, %s3908_s13 }
 0x230   : > { %3362 = vrot.lane.b32.xlu0 %v3899_v0, %s3908_s13  ;;  %3360 = vrot.lane.b32.xlu1 %v4436_v33, %s3908_s13  ;;  %s3841_s13 = sshll.u32 %s3909_s12, 4  ;;  %s3842_s13 = int_to_ptr.vmem [resolvable:$false] %s3841_s13 }
 0x231   : > { %s3843_s18 = scalar_lea.vmem %s3842_s13, 1536  ;;  %p3844_p0 = scmp.lt.s32.totalorder %s3578_s23, %s3842_s13 }
 0x232   : > { %p3845_p1 = scmp.lt.s32.totalorder %s3843_s18, %s3837_s10 }
 0x234   : > { %3535 = vperm.xlu0 %3826, %v3532_v52   ;;  %3523 = vperm.xlu1 %3827, %v3520_v53   ;;  %p3846_p2 = por %p3845_p1, %p3844_p0 }
 0x236   : > { %p3847_p3 = pnand %p3846_p2, %p3840_p13 }
 0x23a   : > { %v2154_v57 = vpop.permute.xlu1 %2153  ;;  %v1990_v60 = vpop.permute.xlu0 %1989 }
 0x23b   : > { %v2001_v18 = vsel %vm361_vm0, %v1988_v54, %v1990_v60  ;;  %v2165_v46 = vsel %vm528_vm3, %v2152_v55, %v2154_v57 }
 0x23c   : > { %v2011_v63 = vsel %vm372_vm1, %v2001_v18, 0  ;;  %v2175_v23 = vsel %vm372_vm1, %v2165_v46, 0 }
 0x23e   : > { %v1994_v0 = vpop.permute.xlu0 %1993  ;;  %v1992_v5 = vpop.permute.xlu1 %1991 }
 0x23f   : > { %v2002_v35 = vsel %vm361_vm0, %v1990_v60, %v1992_v5  ;;  %v2003_v56 = vsel %vm361_vm0, %v1992_v5, %v1994_v0 }
 0x240   : > { %3704 = vmatprep.subr.msk.bf16.mxu1 %vm372_vm1, %v2002_v35  ;;  %v2017_v13 = vsel %vm372_vm1, %v2003_v56, 0 }
 0x241   : > { %2043 = vmatpush1.bf16.msra.mxu1 %v2011_v63 }
 0x242   : > { %v2156_v8 = vpop.permute.xlu0 %2155  ;;  %v1996_v11 = vpop.permute.xlu1 %1995 }
 0x243   : > { %v2004_v36 = vsel %vm361_vm0, %v1994_v0, %v1996_v11  ;;  %v2166_v14 = vsel %vm528_vm3, %v2154_v57, %v2156_v8  ;;  %v3723_v0 = vld [vmem:[%s4862_s5 + $0xc] sm:$0xf] }
 0x244   : > { %3705 = vmatmul.mubr.msk.bf16.vlgmr.msra.gmra.mxu1 %vm368_vm2, %v3703_v2  ;;  %3706 = vmatprep.subr.msk.bf16.mxu0 %vm372_vm1, %v2004_v36 }
 0x245   : > { %2084 = vmatpush1.bf16.msra.mxu0 %v2017_v13  ;;  %2142 = vmatprep.mubr.bf16.mxu1 %v3901_v1 }
 0x246   : > { %3710 = vmatprep.subr.msk.bf16.mxu0 %vm372_vm1, %v2166_v14  ;;  %v1998_v16 = vpop.permute.xlu0 %1997  ;;  %v2000_v17 = vpop.permute.xlu1 %1999 }
 0x247   : > { %v2005_v19 = vsel %vm361_vm0, %v1996_v11, %v1998_v16  ;;  %v2006_v20 = vsel %vm361_vm0, %v1998_v16, %v2000_v17 }
 0x248   : > { %v2023_v25 = vsel %vm372_vm1, %v2005_v19, 0  ;;  %3707 = vmatmul.mubr.msk.bf16.vlgmr.msra.gmra.mxu0 %vm368_vm2, %v3703_v2  ;;  %3708 = vmatprep.subr.msk.bf16.mxu1 %vm372_vm1, %v2006_v20 }
 0x249   : > { %2125 = vmatpush1.bf16.msra.mxu1 %v2023_v25  ;;  %2207 = vmatpush1.bf16.msra.mxu0 %v2175_v23 }
 0x24a   : > { %v2160_v27 = vpop.permute.xlu0 %2159  ;;  %v2158_v48 = vpop.permute.xlu1 %2157  ;;  %2224 = vmatprep.mubr.bf16.mxu0 %v3901_v1 }
 0x24b   : > { %v2167_v58 = vsel %vm528_vm3, %v2156_v8, %v2158_v48  ;;  %v2168_v4 = vsel %vm528_vm3, %v2158_v48, %v2160_v27  ;;  %v2665_v8 = vsel %vm372_vm1, %v4406_v31, 0  ;;  %v3730_v31 = vld [vmem:[%s4862_s5 + $0x10] sm:$0xf] }
 0x24c   : > { %v2181_v29 = vsel %vm372_vm1, %v2167_v58, 0  ;;  %3709 = vmatmul.mubr.msk.bf16.vlgmr.msra.gmra.mxu1 %vm368_vm2, %v3703_v2  ;;  %3712 = vmatprep.subr.msk.bf16.mxu1 %vm372_vm1, %v2168_v4 }
 0x24d   : > { %2248 = vmatpush1.bf16.msra.mxu1 %v2181_v29  ;;  %2265 = vmatprep.mubr.bf16.mxu1 %v3901_v1  ;;  %v3737_v29 = vld [vmem:[%s4862_s5 + $0x14] sm:$0xf] }
 0x24e   : > { %v2320_v34 = vpop.permute.xlu0 %2319  ;;  %v2162_v9 = vpop.permute.xlu1 %2161 }
 0x24f   : > { %v2169_v37 = vsel %vm528_vm3, %v2160_v27, %v2162_v9 }
 0x250   : > { %3711 = vmatmul.mubr.msk.bf16.vlgmr.msra.gmra.mxu0 %vm368_vm2, %v1977_v30  ;;  %v2187_v3 = vsel %vm372_vm1, %v2169_v37, 0 }
 0x251   : > { %2306 = vmatprep.mubr.bf16.mxu0 %v3901_v1 }
 0x252   : > { %v2324_v59 = vpop.permute.xlu0 %2323  ;;  %v2318_v21 = vpop.permute.xlu1 %2317 }
 0x253   : > { %v2331_v41 = vsel %vm695_vm4, %v2318_v21, %v2320_v34 }
 0x254   : > { %3713 = vmatmul.mubr.msk.bf16.vlgmr.msra.gmra.mxu1 %vm368_vm2, %v1977_v30  ;;  %v2341_v24 = vsel %vm372_vm1, %v2331_v41, 0 }
 0x255   : > { %2390 = vmatprep.mubr.bf16.mxu1 %v3901_v1 }
 0x256   : > { %v2164_v61 = vpop.permute.xlu0 %2163  ;;  %v2322_v62 = vpop.permute.xlu1 %2321 }
 0x257   : > { %v2170_v22 = vsel %vm528_vm3, %v2162_v9, %v2164_v61  ;;  %v2332_v7 = vsel %vm695_vm4, %v2320_v34, %v2322_v62  ;;  %v2333_v39 = vsel %vm695_vm4, %v2322_v62, %v2324_v59 }
 0x258   : > { %3714 = vmatprep.subr.msk.bf16.mxu0 %vm372_vm1, %v2170_v22  ;;  %3717 = vmatprep.subr.msk.bf16.mxu1 %vm372_vm1, %v2332_v7  ;;  %v2347_v26 = vsel %vm372_vm1, %v2333_v39, 0  ;;  %v3744_v7 = vld [vmem:[%s4862_s5 + $0x18] sm:$0xf] }
 0x259   : > { %2289 = vmatpush1.bf16.msra.mxu0 %v2187_v3  ;;  %2373 = vmatpush1.bf16.msra.mxu1 %v2341_v24 }
 0x25a   : > { %v2328_v38 = vpop.permute.xlu0 %2327  ;;  %v2326_v45 = vpop.permute.xlu1 %2325 }
 0x25b   : > { %v2334_v12 = vsel %vm695_vm4, %v2324_v59, %v2326_v45  ;;  %v2335_v15 = vsel %vm695_vm4, %v2326_v45, %v2328_v38 }
 0x25c   : > { %3715 = vmatmul.mubr.msk.bf16.vlgmr.msra.gmra.mxu0 %vm368_vm2, %v1977_v30  ;;  %3718 = vmatmul.mubr.msk.bf16.vlgmr.msra.gmra.mxu1 %vm368_vm2, %v3716_v6  ;;  %v2353_v49 = vsel %vm372_vm1, %v2335_v15, 0 }
 0x25d   : > { %3719 = vmatprep.subr.msk.bf16.mxu0 %vm372_vm1, %v2334_v12  ;;  %2431 = vmatprep.mubr.bf16.mxu0 %v3901_v1 }
 0x25e   : > { %2414 = vmatpush1.bf16.msra.mxu0 %v2347_v26  ;;  %v2490_v32 = vpop.permute.xlu0 %2489  ;;  %v2330_v28 = vpop.permute.xlu1 %2329  ;;  %2472 = vmatprep.mubr.bf16.mxu1 %v3901_v1 }
 0x25f   : > { %v2336_v47 = vsel %vm695_vm4, %v2328_v38, %v2330_v28 }
 0x260   : > { %3721 = vmatprep.subr.msk.bf16.mxu1 %vm372_vm1, %v2336_v47 }
 0x261   : > { %2455 = vmatpush1.bf16.msra.mxu1 %v2353_v49 }
 0x262   : > { %v2494_v43 = vpop.permute.xlu0 %2493  ;;  %v2492_v50 = vpop.permute.xlu1 %2491 }
 0x263   : > { %v2503_v51 = vsel %vm868_vm5, %v2490_v32, %v2492_v50  ;;  %v2504_v52 = vsel %vm868_vm5, %v2492_v50, %v2494_v43 }
 0x264   : > { %v2513_v53 = vsel %vm372_vm1, %v2503_v51, 0  ;;  %3720 = vmatmul.mubr.msk.bf16.vlgmr.msra.gmra.mxu0 %vm368_vm2, %v3716_v6  ;;  %3722 = vmatmul.mubr.msk.bf16.vlgmr.msra.gmra.mxu1 %vm368_vm2, %v3716_v6 }
 0x265   : > { %3724 = vmatprep.subr.msk.bf16.mxu0 %vm372_vm1, %v2504_v52  ;;  %2562 = vmatprep.mubr.bf16.mxu0 %v3901_v1 }
 0x266   : > { %2545 = vmatpush1.bf16.msra.mxu0 %v2513_v53  ;;  %v2498_v54 = vpop.permute.xlu0 %2497  ;;  %v2496_v55 = vpop.permute.xlu1 %2495  ;;  %2603 = vmatprep.mubr.bf16.mxu1 %v3901_v1 }
 0x267   : > { %v2505_v57 = vsel %vm868_vm5, %v2494_v43, %v2496_v55  ;;  %v2506_v60 = vsel %vm868_vm5, %v2496_v55, %v2498_v54 }
 0x268   : > { %v2519_v18 = vsel %vm372_vm1, %v2505_v57, 0  ;;  %3726 = vmatprep.subr.msk.bf16.mxu1 %vm372_vm1, %v2506_v60 }
 0x269   : > { %2586 = vmatpush1.bf16.msra.mxu1 %v2519_v18 }
 0x26a   : > { %v2502_v5 = vpop.permute.xlu0 %2501  ;;  %3731 = vmatprep.subr.msk.bf16.mxu1 %vm372_vm1, %v4417_v10  ;;  %v2500_v35 = vpop.permute.xlu1 %2499 }
 0x26b   : > { %v2507_v63 = vsel %vm868_vm5, %v2498_v54, %v2500_v35  ;;  %v2508_v56 = vsel %vm868_vm5, %v2500_v35, %v2502_v5  ;;  %v3751_v54 = vld [vmem:[%s4862_s5 + $0x1c] sm:$0xf] }
 0x26c   : > { %v2525_v2 = vsel %vm372_vm1, %v2507_v63, 0  ;;  %3725 = vmatmul.mubr.msk.bf16.vlgmr.msra.gmra.mxu0 %vm368_vm2, %v3723_v0  ;;  %3727 = vmatmul.mubr.msk.bf16.vlgmr.msra.gmra.mxu1 %vm368_vm2, %v3723_v0 }
 0x26d   : > { %3728 = vmatprep.subr.msk.bf16.mxu0 %vm372_vm1, %v2508_v56  ;;  %2697 = vmatpush1.bf16.msra.mxu1 %v2665_v8 }
 0x26e   : > { %2627 = vmatpush1.bf16.msra.mxu0 %v2525_v2  ;;  %v2837_v11 = vpop.permute.xlu0 %2836  ;;  %3735 = vmatprep.subr.msk.bf16.mxu1 %vm372_vm1, %v4436_v33  ;;  %v2835_v10 = vpop.permute.xlu1 %2834  ;;  %v2671_v33 = vsel %vm372_vm1, %v4419_v42, 0 }
 0x26f   : > { %3733 = vmatprep.subr.msk.bf16.mxu0 %vm372_vm1, %v4428_v44  ;;  %2644 = vmatprep.mubr.bf16.mxu0 %v3901_v1  ;;  %v2677_v44 = vsel %vm372_vm1, %v4434_v40, 0  ;;  %v2848_v19 = vsel %vm1214_vm6, %v2835_v10, %v2837_v11  ;;  %v3758_v10 = vld [vmem:[%s4862_s5 + $0x20] sm:$0xf] }
 0x270   : > { %2714 = vmatprep.mubr.bf16.mxu1 %v3901_v1  ;;  %v2858_v23 = vsel %vm372_vm1, %v2848_v19, 0 }
 0x272   : > { %v2841_v36 = vpop.permute.xlu0 %2840  ;;  %v2839_v13 = vpop.permute.xlu1 %2838 }
 0x273   : > { %v2849_v46 = vsel %vm1214_vm6, %v2837_v11, %v2839_v13  ;;  %v2850_v42 = vsel %vm1214_vm6, %v2839_v13, %v2841_v36 }
 0x274   : > { %3729 = vmatmul.mubr.msk.bf16.vlgmr.msra.gmra.mxu0 %vm368_vm2, %v3723_v0  ;;  %3732 = vmatmul.mubr.msk.bf16.vlgmr.msra.gmra.mxu1 %vm368_vm2, %v3730_v31  ;;  %v2864_v25 = vsel %vm372_vm1, %v2850_v42, 0 }
 0x275   : > { %2738 = vmatpush1.bf16.msra.mxu0 %v2671_v33  ;;  %2779 = vmatpush1.bf16.msra.mxu1 %v2677_v44 }
 0x276   : > { %3738 = vmatprep.subr.msk.bf16.mxu0 %vm372_vm1, %v2849_v46  ;;  %v3007_v14 = vpop.permute.xlu0 %3006  ;;  %v2843_v16 = vpop.permute.xlu1 %2842  ;;  %2755 = vmatprep.mubr.bf16.mxu0 %v3901_v1 }
 0x277   : > { %v2851_v17 = vsel %vm1214_vm6, %v2841_v36, %v2843_v16  ;;  %2796 = vmatprep.mubr.bf16.mxu1 %v3901_v1 }
 0x278   : > { %3740 = vmatprep.subr.msk.bf16.mxu1 %vm372_vm1, %v2851_v17 }
 0x27a   : > { %v3011_v20 = vpop.permute.xlu0 %3010  ;;  %v2847_v40 = vpop.permute.xlu1 %2846 }
 0x27c   : > { %3734 = vmatmul.mubr.msk.bf16.vlgmr.msra.gmra.mxu0 %vm368_vm2, %v3730_v31  ;;  %3736 = vmatmul.mubr.msk.bf16.vlgmr.msra.gmra.mxu1 %vm368_vm2, %v3730_v31 }
 0x27d   : > { %2890 = vmatpush1.bf16.msra.mxu0 %v2858_v23  ;;  %2931 = vmatpush1.bf16.msra.mxu1 %v2864_v25 }
 0x27e   : > { %v3015_v27 = vpop.permute.xlu0 %3014  ;;  %v3009_v48 = vpop.permute.xlu1 %3008  ;;  %2907 = vmatprep.mubr.bf16.mxu0 %v3901_v1  ;;  %2948 = vmatprep.mubr.bf16.mxu1 %v3901_v1 }
 0x27f   : > { %v3021_v58 = vsel %vm1387_vm7, %v3009_v48, %v3011_v20  ;;  %v3020_v4 = vsel %vm1387_vm7, %v3007_v14, %v3009_v48 }
 0x280   : > { %3745 = vmatprep.subr.msk.bf16.mxu1 %vm372_vm1, %v3021_v58  ;;  %v3030_v21 = vsel %vm372_vm1, %v3020_v4, 0 }
 0x282   : > { %v2845_v30 = vpop.permute.xlu0 %2844  ;;  %v3013_v34 = vpop.permute.xlu1 %3012 }
 0x283   : > { %v2852_v9 = vsel %vm1214_vm6, %v2843_v16, %v2845_v30  ;;  %v2853_v59 = vsel %vm1214_vm6, %v2845_v30, %v2847_v40  ;;  %v3023_v41 = vsel %vm1387_vm7, %v3013_v34, %v3015_v27  ;;  %v3022_v22 = vsel %vm1387_vm7, %v3011_v20, %v3013_v34 }
 0x284   : > { %v2870_v37 = vsel %vm372_vm1, %v2852_v9, 0  ;;  %3739 = vmatmul.mubr.msk.bf16.vlgmr.msra.gmra.mxu0 %vm368_vm2, %v3737_v29  ;;  %3741 = vmatmul.mubr.msk.bf16.vlgmr.msra.gmra.mxu1 %vm368_vm2, %v3737_v29  ;;  %v3036_v38 = vsel %vm372_vm1, %v3022_v22, 0 }
 0x285   : > { %3742 = vmatprep.subr.msk.bf16.mxu0 %vm372_vm1, %v2853_v59  ;;  %3062 = vmatpush1.bf16.msra.mxu1 %v3030_v21 }
 0x286   : > { %2972 = vmatpush1.bf16.msra.mxu0 %v2870_v37  ;;  %v3019_v61 = vpop.permute.xlu0 %3018  ;;  %v3179_v62 = vpop.permute.xlu1 %3178  ;;  %2989 = vmatprep.mubr.bf16.mxu0 %v3901_v1 }
 0x287   : > { %3747 = vmatprep.subr.msk.bf16.mxu0 %vm372_vm1, %v3023_v41  ;;  %3079 = vmatprep.mubr.bf16.mxu1 %v3901_v1 }
 0x28a   : > { %v3181_v3 = vpop.permute.xlu0 %3180  ;;  %v3017_v24 = vpop.permute.xlu1 %3016 }
 0x28b   : > { %v3024_v6 = vsel %vm1387_vm7, %v3015_v27, %v3017_v24  ;;  %v3025_v39 = vsel %vm1387_vm7, %v3017_v24, %v3019_v61  ;;  %v3192_v32 = vsel %vm1560_vm8, %v3179_v62, %v3181_v3 }
 0x28c   : > { %v3042_v45 = vsel %vm372_vm1, %v3024_v6, 0  ;;  %3743 = vmatmul.mubr.msk.bf16.vlgmr.msra.gmra.mxu0 %vm368_vm2, %v3737_v29  ;;  %3746 = vmatmul.mubr.msk.bf16.vlgmr.msra.gmra.mxu1 %vm368_vm2, %v3744_v7  ;;  %v3202_v50 = vsel %vm372_vm1, %v3192_v32, 0 }
 0x28d   : > { %3103 = vmatpush1.bf16.msra.mxu0 %v3036_v38  ;;  %3749 = vmatprep.subr.msk.bf16.mxu1 %vm372_vm1, %v3025_v39 }
 0x28e   : > { %3144 = vmatpush1.bf16.msra.mxu1 %v3042_v45  ;;  %v3185_v12 = vpop.permute.xlu0 %3184  ;;  %v3183_v26 = vpop.permute.xlu1 %3182  ;;  %3120 = vmatprep.mubr.bf16.mxu0 %v3901_v1 }
 0x28f   : > { %v3193_v15 = vsel %vm1560_vm8, %v3181_v3, %v3183_v26  ;;  %3161 = vmatprep.mubr.bf16.mxu1 %v3901_v1  ;;  %v3194_v28 = vsel %vm1560_vm8, %v3183_v26, %v3185_v12 }
 0x290   : > { %3752 = vmatprep.subr.msk.bf16.mxu0 %vm372_vm1, %v3193_v15  ;;  %v3208_v51 = vsel %vm372_vm1, %v3194_v28, 0 }
 0x292   : > { %v3351_v47 = vpop.permute.xlu0 %3350  ;;  %v3187_v49 = vpop.permute.xlu1 %3186 }
 0x293   : > { %v3195_v43 = vsel %vm1560_vm8, %v3185_v12, %v3187_v49 }
 0x294   : > { %3748 = vmatmul.mubr.msk.bf16.vlgmr.msra.gmra.mxu0 %vm368_vm2, %v3744_v7  ;;  %3750 = vmatmul.mubr.msk.bf16.vlgmr.msra.gmra.mxu1 %vm368_vm2, %v3744_v7 }
 0x295   : > { %3234 = vmatpush1.bf16.msra.mxu0 %v3202_v50  ;;  %3754 = vmatprep.subr.msk.bf16.mxu1 %vm372_vm1, %v3195_v43 }
 0x296   : > { %3275 = vmatpush1.bf16.msra.mxu1 %v3208_v51  ;;  %v3355_v52 = vpop.permute.xlu0 %3354  ;;  %v3191_v53 = vpop.permute.xlu1 %3190  ;;  %3251 = vmatprep.mubr.bf16.mxu0 %v3901_v1 }
 0x297   : > { %3292 = vmatprep.mubr.bf16.mxu1 %v3901_v1 }
 0x29a   : > { %v3189_v55 = vpop.permute.xlu0 %3188  ;;  %v3353_v57 = vpop.permute.xlu1 %3352 }
 0x29b   : > { %v3196_v60 = vsel %vm1560_vm8, %v3187_v49, %v3189_v55  ;;  %v3197_v18 = vsel %vm1560_vm8, %v3189_v55, %v3191_v53  ;;  %v3364_v0 = vsel %vm1733_vm9, %v3351_v47, %v3353_v57  ;;  %v3365_v5 = vsel %vm1733_vm9, %v3353_v57, %v3355_v52 }
 0x29c   : > { %v3214_v35 = vsel %vm372_vm1, %v3196_v60, 0  ;;  %v3374_v63 = vsel %vm372_vm1, %v3364_v0, 0  ;;  %3753 = vmatmul.mubr.msk.bf16.vlgmr.msra.gmra.mxu0 %vm368_vm2, %v3751_v54  ;;  %3755 = vmatmul.mubr.msk.bf16.vlgmr.msra.gmra.mxu1 %vm368_vm2, %v3751_v54 }
 0x29d   : > { %3756 = vmatprep.subr.msk.bf16.mxu0 %vm372_vm1, %v3197_v18  ;;  %3759 = vmatprep.subr.msk.bf16.mxu1 %vm372_vm1, %v3365_v5 }
 0x29e   : > { %3316 = vmatpush1.bf16.msra.mxu0 %v3214_v35  ;;  %3406 = vmatpush1.bf16.msra.mxu1 %v3374_v63  ;;  %v3359_v56 = vpop.permute.xlu0 %3358  ;;  %v3357_v2 = vpop.permute.xlu1 %3356 }
 0x29f   : > { %v3367_v8 = vsel %vm1733_vm9, %v3357_v2, %v3359_v56  ;;  %3333 = vmatprep.mubr.bf16.mxu0 %v3901_v1  ;;  %3423 = vmatprep.mubr.bf16.mxu1 %v3901_v1  ;;  %v3366_v11 = vsel %vm1733_vm9, %v3355_v52, %v3357_v2 }
 0x2a0   : > { %3761 = vmatprep.subr.msk.bf16.mxu0 %vm372_vm1, %v3367_v8  ;;  %v3380_v33 = vsel %vm372_vm1, %v3366_v11, 0 }
 0x2a2   : > { %v3363_v31 = vpop.permute.xlu0 %3362  ;;  %v3361_v36 = vpop.permute.xlu1 %3360 }
 0x2a3   : > { %v3368_v13 = vsel %vm1733_vm9, %v3359_v56, %v3361_v36  ;;  %v3369_v46 = vsel %vm1733_vm9, %v3361_v36, %v3363_v31 }
 0x2a4   : > { %v3386_v44 = vsel %vm372_vm1, %v3368_v13, 0  ;;  %3757 = vmatmul.mubr.msk.bf16.vlgmr.msra.gmra.mxu0 %vm368_vm2, %v3751_v54  ;;  %3760 = vmatmul.mubr.msk.bf16.vlgmr.msra.gmra.mxu1 %vm368_vm2, %v3758_v10 }
 0x2a5   : > { %3447 = vmatpush1.bf16.msra.mxu0 %v3380_v33  ;;  %3763 = vmatprep.subr.msk.bf16.mxu1 %vm372_vm1, %v3369_v46 }
 0x2a6   : > { %3488 = vmatpush1.bf16.msra.mxu1 %v3386_v44  ;;  %3464 = vmatprep.mubr.bf16.mxu0 %v3901_v1 }
 0x2a7   : > { %3505 = vmatprep.mubr.bf16.mxu1 %v3901_v1 }
 0x2ac   : > { %3762 = vmatmul.mubr.msk.bf16.vlgmr.msra.gmra.mxu0 %vm368_vm2, %v3758_v10  ;;  %3764 = vmatmul.mubr.msk.bf16.vlgmr.msra.gmra.mxu1 %vm368_vm2, %v3758_v10 }
 0x304   : > { %v2062_v14 = vpop.f32.mrf.mxu1 }
 0x306   : > { %v2064_v16 = vpop.f32.mrf.mxu1 }
 0x308   : > { %v2066_v17 = vpop.f32.mrf.mxu1  ;;  %v2103_v19 = vpop.f32.mrf.mxu0 }
 0x30a   : > { %v2067_v42 = vpop.f32.mrf.mxu1  ;;  %v2105_v20 = vpop.f32.mrf.mxu0 }
 0x30c   : > { %v2107_v40 = vpop.f32.mrf.mxu0  ;;  %v2144_v23 = vpop.f32.mrf.mxu1 }
 0x30e   : > { %v2108_v25 = vpop.f32.mrf.mxu0  ;;  %v2146_v27 = vpop.f32.mrf.mxu1 }
 0x310   : > { %v2148_v48 = vpop.f32.mrf.mxu1  ;;  %v2226_v58 = vpop.f32.mrf.mxu0 }
 0x311   : > { %v4727_v4 = vadd.f32 %v2226_v58, %v2062_v14 }
 0x312   : > { %v2149_v29 = vpop.f32.mrf.mxu1  ;;  %v2228_v1 = vpop.f32.mrf.mxu0 }
 0x313   : > { %v4729_v30 = vadd.f32 %v2228_v1, %v2064_v16 }
 0x314   : > { %v2267_v34 = vpop.f32.mrf.mxu1  ;;  %v2230_v9 = vpop.f32.mrf.mxu0 }
 0x315   : > { %v4731_v59 = vadd.f32 %v2267_v34, %v2103_v19 }
 0x316   : > { %v2269_v21 = vpop.f32.mrf.mxu1  ;;  %v2231_v37 = vpop.f32.mrf.mxu0 }
 0x317   : > { %v4733_v41 = vadd.f32 %v2269_v21, %v2105_v20 }
 0x318   : > { %v2271_v61 = vpop.f32.mrf.mxu1 }
 0x31a   : > { %v2272_v62 = vpop.f32.mrf.mxu1 }
 0x31c   : > { %v2308_v22 = vpop.f32.mrf.mxu0  ;;  %v4735_v7 = vpop.f32.mrf.mxu1 }
 0x31d   : > { %v4737_v3 = vadd.f32 %v2308_v22, %v2144_v23 }
 0x31e   : > { %v2310_v24 = vpop.f32.mrf.mxu0  ;;  %v4739_v6 = vpop.f32.mrf.mxu1 }
 0x31f   : > { %v4741_v39 = vadd.f32 %v2310_v24, %v2146_v27 }
 0x320   : > { %v2312_v38 = vpop.f32.mrf.mxu0  ;;  %v2396_v45 = vpop.f32.mrf.mxu1 }
 0x322   : > { %v2313_v12 = vpop.f32.mrf.mxu0  ;;  %v2397_v26 = vpop.f32.mrf.mxu1 }
 0x323   : > { %v2481_v12 = vadd.f32 %v4735_v7, %v4727_v4 }
 0x324   : > { %v4743_v15 = vpop.f32.mrf.mxu0  ;;  %v4745_v32 = vpop.f32.mrf.mxu1 }
 0x325   : > { %v2485_v4 = vadd.f32 %v4745_v32, %v4737_v3 }
 0x326   : > { %v4747_v28 = vpop.f32.mrf.mxu0  ;;  %v4749_v47 = vpop.f32.mrf.mxu1 }
 0x328   : > { %v2437_v49 = vpop.f32.mrf.mxu0  ;;  %v2478_v43 = vpop.f32.mrf.mxu1 }
 0x329   : > { %v2482_v43 = vadd.f32 %v4739_v6, %v4729_v30  ;;  %v2484_v30 = vadd.f32 %v4747_v28, %v4733_v41 }
 0x32a   : > { %v2438_v50 = vpop.f32.mrf.mxu0  ;;  %v2479_v51 = vpop.f32.mrf.mxu1 }
 0x32c   : > { %v2564_v52 = vpop.f32.mrf.mxu0  ;;  %v4751_v53 = vpop.f32.mrf.mxu1 }
 0x32d   : > { %v2653_v50 = vadd.f32 %v2564_v52, %v2481_v12 }
 0x32e   : > { %v2566_v54 = vpop.f32.mrf.mxu0  ;;  %v4753_v55 = vpop.f32.mrf.mxu1 }
 0x330   : > { %v2568_v57 = vpop.f32.mrf.mxu0  ;;  %v2609_v60 = vpop.f32.mrf.mxu1 }
 0x331   : > { %v2654_v60 = vadd.f32 %v2566_v54, %v2482_v43 }
 0x332   : > { %v2569_v18 = vpop.f32.mrf.mxu0  ;;  %v2610_v0 = vpop.f32.mrf.mxu1 }
 0x334   : > { %v2646_v5 = vpop.f32.mrf.mxu0  ;;  %v2716_v35 = vpop.f32.mrf.mxu1 }
 0x335   : > { %v2805_v18 = vadd.f32 %v2716_v35, %v2653_v50  ;;  %v2657_v35 = vadd.f32 %v2646_v5, %v2485_v4 }
 0x336   : > { %v4755_v63 = vpop.f32.mrf.mxu0  ;;  %v2718_v56 = vpop.f32.mrf.mxu1 }
 0x338   : > { %v2650_v2 = vpop.f32.mrf.mxu0  ;;  %v2720_v8 = vpop.f32.mrf.mxu1 }
 0x339   : > { %v2806_v8 = vadd.f32 %v2718_v56, %v2654_v60 }
 0x33a   : > { %v2651_v11 = vpop.f32.mrf.mxu0  ;;  %v2721_v10 = vpop.f32.mrf.mxu1 }
 0x33c   : > { %v2757_v31 = vpop.f32.mrf.mxu0  ;;  %v2798_v36 = vpop.f32.mrf.mxu1 }
 0x33e   : > { %v4757_v13 = vpop.f32.mrf.mxu0  ;;  %v4759_v46 = vpop.f32.mrf.mxu1 }
 0x340   : > { %v2761_v33 = vpop.f32.mrf.mxu0  ;;  %v2802_v44 = vpop.f32.mrf.mxu1 }
 0x341   : > { %v2483_v44 = vadd.f32 %v4743_v15, %v4731_v59  ;;  %v2486_v59 = vadd.f32 %v4749_v47, %v4741_v39  ;;  %v2656_v15 = vadd.f32 %v4753_v55, %v2484_v30  ;;  %v3536_v47 = vpop.permute.xlu0 %3535 }
 0x342   : > { %v2762_v14 = vpop.f32.mrf.mxu0  ;;  %v2803_v16 = vpop.f32.mrf.mxu1 }
 0x343   : > { %v2655_v54 = vadd.f32 %v4751_v53, %v2483_v44  ;;  %v2658_v53 = vadd.f32 %v4755_v63, %v2486_v59  ;;  %v2808_v5 = vadd.f32 %v4757_v13, %v2656_v15 }
 0x344   : > { %v2909_v17 = vpop.f32.mrf.mxu0  ;;  %v4761_v19 = vpop.f32.mrf.mxu1 }
 0x345   : > { %v2998_v11 = vadd.f32 %v2909_v17, %v2805_v18  ;;  %v4783_v17 = vpop.permute.xlu1 %3523 }
 0x346   : > { %v2911_v42 = vpop.f32.mrf.mxu0  ;;  %v4763_v20 = vpop.f32.mrf.mxu1 }
 0x347   : > { %v2999_v7 = vadd.f32 %v2911_v42, %v2806_v8  ;;  %v2807_v42 = vadd.f32 %v2757_v31, %v2655_v54 }
 0x348   : > { %v2913_v40 = vpop.f32.mrf.mxu0  ;;  %v2954_v23 = vpop.f32.mrf.mxu1 }
 0x349   : > { %v2809_v40 = vadd.f32 %v2798_v36, %v2657_v35  ;;  %v3834_v23 = vld [vmem:[%s4014_s22] sm:$0xff]  ;;  %v3000_v55 = vadd.f32 %v4761_v19, %v2807_v42  ;;  %v2810_v36 = vadd.f32 %v4759_v46, %v2658_v53 }
 0x34a   : > { %v2914_v25 = vpop.f32.mrf.mxu0  ;;  %v2955_v27 = vpop.f32.mrf.mxu1  ;;  %v312_v63 = vunpack.c.h.bf16 %v3834_v23 }
 0x34b   : > { %v311_v25 = vunpack.c.l.bf16 %v3834_v23 }
 0x34c   : > { %v2991_v48 = vpop.f32.mrf.mxu0  ;;  %v3081_v58 = vpop.f32.mrf.mxu1 }
 0x34d   : > { %v3170_v14 = vadd.f32 %v3081_v58, %v2998_v11  ;;  %v3002_v58 = vadd.f32 %v2991_v48, %v2809_v40 }
 0x34e   : > { %v4765_v29 = vpop.f32.mrf.mxu0  ;;  %v3083_v1 = vpop.f32.mrf.mxu1 }
 0x34f   : > { %v3171_v56 = vadd.f32 %v3083_v1, %v2999_v7  ;;  %v3003_v19 = vadd.f32 %v4765_v29, %v2810_v36 }
 0x350   : > { %v2995_v34 = vpop.f32.mrf.mxu0  ;;  %v3085_v9 = vpop.f32.mrf.mxu1 }
 0x351   : > { %v3001_v34 = vadd.f32 %v4763_v20, %v2808_v5 }
 0x352   : > { %v2996_v21 = vpop.f32.mrf.mxu0  ;;  %v3086_v37 = vpop.f32.mrf.mxu1 }
 0x354   : > { %v3122_v61 = vpop.f32.mrf.mxu0  ;;  %v3163_v62 = vpop.f32.mrf.mxu1 }
 0x355   : > { %v3172_v21 = vadd.f32 %v3122_v61, %v3000_v55  ;;  %v3174_v37 = vadd.f32 %v3163_v62, %v3002_v58 }
 0x356   : > { %v3124_v22 = vpop.f32.mrf.mxu0  ;;  %v4767_v24 = vpop.f32.mrf.mxu1 }
 0x357   : > { %v3173_v48 = vadd.f32 %v3124_v22, %v3001_v34  ;;  %v3175_v50 = vadd.f32 %v4767_v24, %v3003_v19  ;;  %v3835_v22 = vld [vmem:[%s4014_s22 + $0x8] sm:$0xff] }
 0x358   : > { %v3126_v38 = vpop.f32.mrf.mxu0  ;;  %v3167_v45 = vpop.f32.mrf.mxu1  ;;  %v313_v11 = vunpack.c.l.bf16 %v3835_v22  ;;  %v314_v35 = vunpack.c.h.bf16 %v3835_v22 }
 0x35a   : > { %v3127_v26 = vpop.f32.mrf.mxu0  ;;  %v3168_v49 = vpop.f32.mrf.mxu1 }
 0x35c   : > { %v3253_v51 = vpop.f32.mrf.mxu0  ;;  %v3294_v57 = vpop.f32.mrf.mxu1 }
 0x35d   : > { %v3342_v16 = vadd.f32 %v3253_v51, %v3170_v14  ;;  %v3344_v46 = vadd.f32 %v3294_v57, %v3172_v21 }
 0x35e   : > { %v3255_v0 = vpop.f32.mrf.mxu0  ;;  %v3296_v2 = vpop.f32.mrf.mxu1 }
 0x35f   : > { %v3343_v41 = vadd.f32 %v3255_v0, %v3171_v56  ;;  %v3345_v51 = vadd.f32 %v3296_v2, %v3173_v48 }
 0x360   : > { %v3257_v10 = vpop.f32.mrf.mxu0  ;;  %v3298_v33 = vpop.f32.mrf.mxu1 }
 0x361   : > { %v3836_v10 = vld [vmem:[%s4014_s22 + $0x10] sm:$0xff]  ;;  %s3776_s22 = smul.u32 768, %s3976_s9  ;;  %s3563_s9 = scalar_lea.sflag [#allocation4], %s296_s20 }
 0x362   : > { %v3258_v6 = vpop.f32.mrf.mxu0  ;;  %v3299_v52 = vpop.f32.mrf.mxu1  ;;  %v315_v33 = vunpack.c.l.bf16 %v3836_v10 }
 0x363   : > { %s4818_s26 = scalar_lea.hbm %s4865_s8, %s3776_s22 }
 0x364   : > { %v3335_v3 = vpop.f32.mrf.mxu0  ;;  %v3425_v32 = vpop.f32.mrf.mxu1 }
 0x365   : > { %v3514_v28 = vadd.f32 %v3425_v32, %v3342_v16  ;;  %v3346_v20 = vadd.f32 %v3335_v3, %v3174_v37  ;;  %v316_v16 = vunpack.c.h.bf16 %v3836_v10 }
 0x366   : > { %v3337_v27 = vpop.f32.mrf.mxu0  ;;  %v3427_v39 = vpop.f32.mrf.mxu1 }
 0x367   : > { %v3526_v1 = vmul.f32 %v4783_v17, %v3514_v28  ;;  %v3515_v31 = vadd.f32 %v3427_v39, %v3343_v41  ;;  %v3347_v29 = vadd.f32 %v3337_v27, %v3175_v50 }
 0x368   : > { %v3339_v13 = vpop.f32.mrf.mxu0  ;;  %v3429_v9 = vpop.f32.mrf.mxu1 }
 0x369   : > { %v3538_v38 = vadd.f32 %v3536_v47, %v3526_v1  ;;  %v3527_v45 = vmul.f32 %v4783_v17, %v3515_v31 }
 0x36a   : > { %v3340_v12 = vpop.f32.mrf.mxu0  ;;  %v3430_v26 = vpop.f32.mrf.mxu1 }
 0x36b   : > { %v3544_v49 = vadd.f32 %v3538_v38, %v311_v25  ;;  %v3539_v43 = vadd.f32 %v3536_v47, %v3527_v45 }
 0x36c   : > { %v3466_v61 = vpop.f32.mrf.mxu0  ;;  %v3507_v62 = vpop.f32.mrf.mxu1 }
 0x36d   : > { %v3550_v60 = vmax.f32 %v3544_v49, 0.0  ;;  %v3545_v18 = vadd.f32 %v3539_v43, %v312_v63  ;;  %v3516_v0 = vadd.f32 %v3466_v61, %v3344_v46  ;;  %v3518_v8 = vadd.f32 %v3507_v62, %v3346_v20 }
 0x36e   : > { %v3468_v44 = vpop.f32.mrf.mxu0  ;;  %v3509_v57 = vpop.f32.mrf.mxu1 }
 0x36f   : > { %3556 = vst [vmem:[%s4803_s17] sm:$0xff] %v3550_v60  ;;  %v3551_v24 = vmax.f32 %v3545_v18, 0.0  ;;  %v3528_v2 = vmul.f32 %v4783_v17, %v3516_v0  ;;  %v3530_v4 = vmul.f32 %v4783_v17, %v3518_v8  ;;  %v3517_v7 = vadd.f32 %v3468_v44, %v3345_v51 }
 0x370   : > { %v3519_v14 = vadd.f32 %v3509_v57, %v3347_v29  ;;  %v3470_v30 = vpop.f32.mrf.mxu0  ;;  %v3511_v6 = vpop.f32.mrf.mxu1 }
 0x371   : > { %3557 = vst [vmem:[%s4803_s17 + $0x8] sm:$0xff] %v3551_v24  ;;  %v3540_v52 = vadd.f32 %v3536_v47, %v3528_v2  ;;  %v3542_v54 = vadd.f32 %v3536_v47, %v3530_v4  ;;  %v3529_v56 = vmul.f32 %v4783_v17, %v3517_v7 }
 0x372   : > { %v3531_v59 = vmul.f32 %v4783_v17, %v3519_v14  ;;  %v3471_v15 = vpop.f32.mrf.mxu0  ;;  %v3512_v3 = vpop.f32.mrf.mxu1 }
 0x373   : > { %v3546_v32 = vadd.f32 %v3540_v52, %v313_v11  ;;  %v3548_v42 = vadd.f32 %v3542_v54, %v315_v33  ;;  %v3541_v40 = vadd.f32 %v3536_v47, %v3529_v56 }
 0x374   : > { %v3543_v41 = vadd.f32 %v3536_v47, %v3531_v59 }
 0x375   : > { %v3552_v28 = vmax.f32 %v3546_v32, 0.0  ;;  %v3554_v53 = vmax.f32 %v3548_v42, 0.0  ;;  %v3547_v5 = vadd.f32 %v3541_v40, %v314_v35 }
 0x376   : > { %v3549_v23 = vadd.f32 %v3543_v41, %v316_v16 }
 0x377   : > { %3558 = vst [vmem:[%s4803_s17 + $0x10] sm:$0xff] %v3552_v28  ;;  %3560 = vst [vmem:[%s4803_s17 + $0x20] sm:$0xff] %v3554_v53  ;;  %v3553_v25 = vmax.f32 %v3547_v5, 0.0 }
 0x378   : > { %v3555_v17 = vmax.f32 %v3549_v23, 0.0 }
 0x379   : > { %3559 = vst [vmem:[%s4803_s17 + $0x18] sm:$0xff] %v3553_v25 }
 0x37a   : > { %3561 = vst [vmem:[%s4803_s17 + $0x28] sm:$0xff] %v3555_v17 }
 0x37b   : > { %3850 = shalt.err (!%p3847_p3)
}
 0x37c   : > { %s3851_s19 = scalar_lea.hbm %s4818_s26, 768  ;;  %s3855_s17 = scalar_lea.hbm %s4865_s8, 1536 }
 0x37d   : > { %p3852_p4 = scmp.ne.s32.totalorder %s4818_s26, %s3851_s19  ;;  %p3856_p9 = scmp.lt.s32.totalorder %s4818_s26, %s4865_s8 }
 0x37e   : > { %p3857_p10 = scmp.lt.s32.totalorder %s3855_s17, %s3851_s19 }
 0x37f   : > { %p3853_p7 = pnand %p3852_p4, %p3993_p5 }
 0x380   : > { %p3858_p11 = por %p3857_p10, %p3856_p9 }
 0x381   : > { %p3854_p8 = pneg %p3853_p7 }
 0x383   : > { %p3859_p12 = pnand %p3858_p11, %p3854_p8 }
 0x385   : > { %3862 = shalt.err (!%p3859_p12)
}
 0x386   : > { %3777 = dma.vmem_to_hbm [thread:$0]  (%p3993_p5), %s3578_s23, 768, %s4818_s26, %s3563_s9  }
 0x387 PF: > { %p3783_p13 = scmp.ge.s32.totalorder %s3897_s30, 2  ;;  %s3589_s25 = sand.u32 1, %s3885_s27  }
 0x388   : > { %s3590_s10 = scalar_lea.sflag [#allocation4], %s3589_s25 }
 0x389   : > { %p3780_p0 = pnand %p3783_p13, %p3997_p6 }
 0x38b   : > { %p3781_p1 = pneg %p3780_p0 }
 0x38d   : > { %3880 = dma.done.wait (%p3781_p1), %s3590_s10, 768  }
 0x38e   : > { %3882 = vsyncadd (%p3781_p1), %s3590_s10, 4294966528  ;;  %p18_p2 = scmp.ge.s32.totalorder %s3980_s11, 4   ;;  %s4868_s27 = smov %s3889_s28 }
 0x38f   : > { %s4869_s28 = smov %s3893_s29  ;;  %s4870_s29 = smov %s3991_s14 }
 0x390   : > { %s4871_s30 = smov %s3980_s11  ;;  %20 = sbr.rel (!%p18_p2) target bundleno = 3 (0x3), region = 103 }
 0x395   :  { %3595 = vsyncpa [#allocation4], 1 }
 0x396   :  { %3597 = vsyncpa [#allocation4 + $0x1], 1 }

</bundles_post_ra>
